<compile_context>
chip_gen: v7x
topology: tpu7x:2x2x1
jax: 0.10.0
libtpu: 0.0.40
codegen_flags: <defaults>
</compile_context>

<pallas_src>
import numpy as np

import jax
import jax.numpy as jnp
from jax.experimental import pallas as pl
from jax.experimental.pallas import tpu as pltpu


# ----------------------------------------------------------------------------
# The fused kernel: conv1 -> conv2 -> (flatten) -> fc1 -> relu -> fcOut
# One grid step == one batch sample.
# ----------------------------------------------------------------------------
def _convnet_kernel(x_ref, r1_ref, h1_ref, b1_ref, r2_ref, h2_ref, b2_ref,
                    wfc_ref, bfc_ref, wout_ref, bout_ref, out_ref):
    f32 = jnp.float32
    x = x_ref[0]                                                  # (64, 128)

    # layer1: Conv(2->4, k5, s2, p2) + BN + ReLU, output packed as [oh, oc*32+ow]
    acc1 = jnp.zeros((25, 128), f32)
    for kh in range(5):
        rows = jnp.dot(r1_ref[kh], x, preferred_element_type=f32)        # (25,64)@(64,128)
        acc1 = acc1 + jnp.dot(rows, h1_ref[kh], preferred_element_type=f32)
    y1 = jnp.maximum(acc1 + b1_ref[...], 0.0)                    # (25, 128)

    # layer2: Conv(4->8, k3, s2, p1) + BN + ReLU, output packed as [oh, oc*16+ow]
    acc2 = jnp.zeros((13, 128), f32)
    for kh in range(3):
        rows = jnp.dot(r2_ref[kh], y1, preferred_element_type=f32)       # (13,25)@(25,128)
        acc2 = acc2 + jnp.dot(rows, h2_ref[kh], preferred_element_type=f32)
    a2 = jnp.maximum(acc2 + b2_ref[...], 0.0)                    # (13, 128)

    # flatten is folded into wfc's row permutation; Dropout(p=0) is identity.
    h = jnp.zeros((1, 128), f32)
    for oh in range(13):
        h = h + jnp.dot(a2[oh:oh + 1, :], wfc_ref[oh], preferred_element_type=f32)
    h = jnp.maximum(h + bfc_ref[...], 0.0)                       # (1, 128)

    # fcOut
    out_ref[0] = jnp.dot(h, wout_ref[...], preferred_element_type=f32) + bout_ref[...]


# ----------------------------------------------------------------------------
# Parameter prep (one-time): fold BN, build structured matmul operands.
# ----------------------------------------------------------------------------
def prepare_params(params, eps=1e-5):
    f32 = jnp.float32

    def fold_bn(w, b, g, beta, m, v):
        s = g / jnp.sqrt(v + eps)
        return w * s[:, None, None, None], s * (b - m) + beta

    w1f, b1f = fold_bn(params["w1"], params["b1"], params["g1"],
                       params["beta1"], params["m1"], params["v1"])
    w2f, b2f = fold_bn(params["w2"], params["b2"], params["g2"],
                       params["beta2"], params["m2"], params["v2"])

    def row_select(kh_size, h_out, h_in_cols, h_in_valid, pad):
        # R[kh, oh, 2*oh + kh - pad] = 1  (stride-2 row selection, zero-pad rows)
        r = np.zeros((kh_size, h_out, h_in_cols), np.float32)
        for kh in range(kh_size):
            for oh in range(h_out):
                h = 2 * oh + kh - pad
                if 0 <= h < h_in_valid:
                    r[kh, oh, h] = 1.0
        return jnp.asarray(r)

    def lane_map(wf, in_block, out_block, w_out, w_in_valid, pad):
        # H[kh, ic*in_block + (2*ow + kw - pad), oc*out_block + ow] = wf[oc,ic,kh,kw]
        oc_n, ic_n, kh_n, kw_n = wf.shape
        oc, ic, kh, kw, ow = np.meshgrid(
            np.arange(oc_n), np.arange(ic_n), np.arange(kh_n),
            np.arange(kw_n), np.arange(w_out), indexing="ij")
        w_in = 2 * ow + kw - pad
        valid = (w_in >= 0) & (w_in < w_in_valid)
        in_lane = ic * in_block + np.clip(w_in, 0, w_in_valid - 1)
        out_lane = oc * out_block + ow
        vals = jnp.where(jnp.asarray(valid), wf[oc, ic, kh, kw], 0.0)
        h = jnp.zeros((kh_n, 128, 128), f32)
        return h.at[kh, in_lane, out_lane].add(vals.astype(f32))

    def lane_bias(b, block, w_out):
        lanes = np.arange(128)
        ch, w = lanes // block, lanes % block
        valid = (w < w_out) & (ch < b.shape[0])
        vals = jnp.where(jnp.asarray(valid), b[np.minimum(ch, b.shape[0] - 1)], 0.0)
        return vals.astype(f32)[None, :]

    # conv1: padded input packed as lanes ic*64 + w (w in [0,54)); output lanes oc*32 + ow.
    r1 = row_select(5, 25, 64, 54, 0)
    h1 = lane_map(w1f, in_block=64, out_block=32, w_out=25, w_in_valid=54, pad=0)
    b1 = lane_bias(b1f, 32, 25)
    # conv2: its input (conv1 output) is packed as lanes ic*32 + w (w in [0,25)).
    r2 = row_select(3, 13, 25, 25, 1)
    h2 = lane_map(w2f, in_block=32, out_block=16, w_out=13, w_in_valid=25, pad=1)
    b2 = lane_bias(b2f, 16, 13)

    # fc1: permute rows from PyTorch NCHW-flatten order (oc*169 + oh*13 + ow)
    # to the kernel's [oh, oc*16 + ow] lane layout; pad outputs 100 -> 128 lanes.
    wfc = jnp.pad(params["fc1_w"].T.astype(f32), ((0, 0), (0, 28)))        # (1352, 128)
    wfc = wfc.reshape(8, 13, 13, 128).transpose(1, 0, 2, 3)                # (oh, oc, ow, j)
    wfc = jnp.pad(wfc, ((0, 0), (0, 0), (0, 3), (0, 0))).reshape(13, 128, 128)
    bfc = jnp.pad(params["fc1_b"].astype(f32), (0, 28))[None, :]           # (1, 128)

    # fcOut
    wout = jnp.pad(params["fcOut_w"].T.astype(f32), ((0, 28), (0, 0)))     # (128, C)
    bout = params["fcOut_b"].astype(f32)[None, :]                          # (1, C)

    return {"r1": r1, "h1": h1, "b1": b1, "r2": r2, "h2": h2, "b2": b2,
            "wfc": wfc, "bfc": bfc, "wout": wout, "bout": bout}


# ----------------------------------------------------------------------------
# Forward pass wrapper
# ----------------------------------------------------------------------------
def convnet_forward(x, prep):
    n = x.shape[0]
    num_classes = prep["wout"].shape[1]

    # Input layout plumbing (same byte count as x, no im2col amplification):
    #   xl[n, h, ic*64 + w] = x_pad[n, ic, h, w]   with pad=2 -> 54x54
    xp = jnp.pad(x, ((0, 0), (0, 0), (2, 2), (2, 2)))            # (N, 2, 54, 54)
    xl = jnp.zeros((n, 64, 128), jnp.float32)
    for ic in range(2):
        xl = xl.at[:, :54, ic * 64:ic * 64 + 54].set(xp[:, ic])

    def full_spec(a):
        nd = a.ndim
        return pl.BlockSpec(a.shape, lambda i, _nd=nd: (0,) * _nd)

    out3 = pl.pallas_call(
        _convnet_kernel,
        out_shape=jax.ShapeDtypeStruct((n, 1, num_classes), jnp.float32),
        grid=(n,),
        in_specs=[
            pl.BlockSpec((1, 64, 128), lambda i: (i, 0, 0)),
            full_spec(prep["r1"]), full_spec(prep["h1"]), full_spec(prep["b1"]),
            full_spec(prep["r2"]), full_spec(prep["h2"]), full_spec(prep["b2"]),
            full_spec(prep["wfc"]), full_spec(prep["bfc"]),
            full_spec(prep["wout"]), full_spec(prep["bout"]),
        ],
        out_specs=pl.BlockSpec((1, 1, num_classes), lambda i: (i, 0, 0)),
        compiler_params=pltpu.CompilerParams(
            dimension_semantics=("parallel",),
            vmem_limit_bytes=32 * 1024 * 1024),
    )(xl, prep["r1"], prep["h1"], prep["b1"], prep["r2"], prep["h2"],
      prep["b2"], prep["wfc"], prep["bfc"], prep["wout"], prep["bout"])
    return out3[:, 0, :]


# ----------------------------------------------------------------------------
# Pure-JAX reference (for a numerical self-check) and deterministic params
# ----------------------------------------------------------------------------
def reference_forward(x, p, eps=1e-5):
    hp = jax.lax.Precision.HIGHEST

    def block(x, w, b, g, beta, m, v, stride, pad):
        y = jax.lax.conv_general_dilated(
            x, w, (stride, stride), ((pad, pad), (pad, pad)),
            dimension_numbers=("NCHW", "OIHW", "NCHW"), precision=hp)
        y = y + b[None, :, None, None]
        y = (y - m[None, :, None, None]) / jnp.sqrt(v[None, :, None, None] + eps)
        y = y * g[None, :, None, None] + beta[None, :, None, None]
        return jnp.maximum(y, 0.0)

    y = block(x, p["w1"], p["b1"], p["g1"], p["beta1"], p["m1"], p["v1"], 2, 2)
    y = block(y, p["w2"], p["b2"], p["g2"], p["beta2"], p["m2"], p["v2"], 2, 1)
    f = y.reshape(y.shape[0], -1)
    h = jnp.maximum(jnp.dot(f, p["fc1_w"].T, precision=hp) + p["fc1_b"], 0.0)
    return jnp.dot(h, p["fcOut_w"].T, precision=hp) + p["fcOut_b"]


def init_params(key, num_classes=2):
    ks = jax.random.split(key, 8)
    return {
        # Conv2d(2, 4, k=5): weight (OC, IC, KH, KW), bias (OC,)
        "w1": 0.1 * jax.random.normal(ks[0], (4, 2, 5, 5), jnp.float32),
        "b1": 0.1 * jax.random.normal(ks[1], (4,), jnp.float32),
        "g1": jnp.ones((4,), jnp.float32) * 1.1,
        "beta1": jnp.ones((4,), jnp.float32) * 0.05,
        "m1": jnp.zeros((4,), jnp.float32),
        "v1": jnp.ones((4,), jnp.float32),
        # Conv2d(4, 8, k=3)
        "w2": 0.1 * jax.random.normal(ks[2], (8, 4, 3, 3), jnp.float32),
        "b2": 0.1 * jax.random.normal(ks[3], (8,), jnp.float32),
        "g2": jnp.ones((8,), jnp.float32) * 0.9,
        "beta2": jnp.ones((8,), jnp.float32) * -0.05,
        "m2": jnp.zeros((8,), jnp.float32),
        "v2": jnp.ones((8,), jnp.float32),
        # Linear(13*13*8 -> 100), PyTorch layout (out, in)
        "fc1_w": 0.02 * jax.random.normal(ks[4], (100, 13 * 13 * 8), jnp.float32),
        "fc1_b": 0.02 * jax.random.normal(ks[5], (100,), jnp.float32),
        # Linear(100 -> num_classes)
        "fcOut_w": 0.05 * jax.random.normal(ks[6], (num_classes, 100), jnp.float32),
        "fcOut_b": 0.05 * jax.random.normal(ks[7], (num_classes,), jnp.float32),
    }


if __name__ == "__main__":
    key = jax.random.PRNGKey(0)
    k_x, k_p = jax.random.split(key)
    # fc1 expects 13*13*8 features => spatial 50: 50 -(k5,s2,p2)-> 25 -(k3,s2,p1)-> 13
    x = jax.random.normal(k_x, (2, 2, 50, 50), jnp.float32)       # NCHW, like PyTorch
    params = init_params(k_p, num_classes=2)

    prep = prepare_params(params)                                 # one-time weight prep
    fwd = jax.jit(convnet_forward)
    out = jax.block_until_ready(fwd(x, prep))
    assert out.shape == (2, 2) and out.dtype == jnp.float32

    ref = jax.block_until_ready(reference_forward(x, params))
    max_err = float(jnp.max(jnp.abs(out - ref)))
    if max_err > 2e-3:
        raise AssertionError(f"kernel mismatch vs reference: max_err={max_err}")
    print("KERNEL_OK")
</pallas_src>

<mosaic_0001>
module attributes {stable_mosaic.version = 11 : i64} {
  func.func @_convnet_kernel(%arg0: i32, %arg1: memref<1x64x128xf32, #tpu.memory_space<vmem>>, %arg2: memref<5x25x64xf32, #tpu.memory_space<vmem>>, %arg3: memref<5x128x128xf32, #tpu.memory_space<vmem>>, %arg4: memref<1x128xf32, #tpu.memory_space<vmem>>, %arg5: memref<3x13x25xf32, #tpu.memory_space<vmem>>, %arg6: memref<3x128x128xf32, #tpu.memory_space<vmem>>, %arg7: memref<1x128xf32, #tpu.memory_space<vmem>>, %arg8: memref<13x128x128xf32, #tpu.memory_space<vmem>>, %arg9: memref<1x128xf32, #tpu.memory_space<vmem>>, %arg10: memref<128x2xf32, #tpu.memory_space<vmem>>, %arg11: memref<1x2xf32, #tpu.memory_space<vmem>>, %arg12: memref<1x1x2xf32, #tpu.memory_space<vmem>>) attributes {dimension_semantics = [#tpu.dimension_semantics<parallel>], iteration_bounds = array<i64: 2>, scalar_prefetch = 0 : i64, scratch_operands = 0 : i64, tpu.core_type = #tpu.core_type<tc>, window_params = [{transform_indices = @transform_0, window_bounds = array<i64: 1, 64, 128>}, {pipeline_mode = #tpu.pipeline_mode<synchronous>, transform_indices = @transform_1, window_bounds = array<i64: 5, 25, 64>}, {pipeline_mode = #tpu.pipeline_mode<synchronous>, transform_indices = @transform_2, window_bounds = array<i64: 5, 128, 128>}, {pipeline_mode = #tpu.pipeline_mode<synchronous>, transform_indices = @transform_3, window_bounds = array<i64: 1, 128>}, {pipeline_mode = #tpu.pipeline_mode<synchronous>, transform_indices = @transform_4, window_bounds = array<i64: 3, 13, 25>}, {pipeline_mode = #tpu.pipeline_mode<synchronous>, transform_indices = @transform_5, window_bounds = array<i64: 3, 128, 128>}, {pipeline_mode = #tpu.pipeline_mode<synchronous>, transform_indices = @transform_6, window_bounds = array<i64: 1, 128>}, {pipeline_mode = #tpu.pipeline_mode<synchronous>, transform_indices = @transform_7, window_bounds = array<i64: 13, 128, 128>}, {pipeline_mode = #tpu.pipeline_mode<synchronous>, transform_indices = @transform_8, window_bounds = array<i64: 1, 128>}, {pipeline_mode = #tpu.pipeline_mode<synchronous>, transform_indices = @transform_9, window_bounds = array<i64: 128, 2>}, {pipeline_mode = #tpu.pipeline_mode<synchronous>, transform_indices = @transform_10, window_bounds = array<i64: 1, 2>}, {transform_indices = @transform_11, window_bounds = array<i64: 1, 1, 2>}]} {
    %c0 = arith.constant 0 : index
    %c0_0 = arith.constant 0 : index
    %c0_1 = arith.constant 0 : index
    %0 = vector.load %arg1[%c0, %c0_0, %c0_1] : memref<1x64x128xf32, #tpu.memory_space<vmem>>, vector<1x64x128xf32>
    %1 = vector.shape_cast %0 : vector<1x64x128xf32> to vector<64x128xf32>
    %cst = arith.constant 0.000000e+00 : f32
    %2 = vector.broadcast %cst : f32 to vector<25x128xf32>
    %c0_2 = arith.constant 0 : index
    %c0_3 = arith.constant 0 : index
    %c0_4 = arith.constant 0 : index
    %3 = vector.load %arg2[%c0_2, %c0_3, %c0_4] : memref<5x25x64xf32, #tpu.memory_space<vmem>>, vector<1x25x64xf32>
    %4 = vector.shape_cast %3 : vector<1x25x64xf32> to vector<25x64xf32>
    %cst_5 = arith.constant dense<0.000000e+00> : vector<25x128xf32>
    %5 = tpu.matmul %4, %1, %cst_5 {dimension_numbers = #tpu.dot_dimension_numbers<[1], [0], [0], [1], [0, 0, 1, 1], [], []>} : vector<25x64xf32>, vector<64x128xf32>, vector<25x128xf32> -> vector<25x128xf32>
    %c0_6 = arith.constant 0 : index
    %c0_7 = arith.constant 0 : index
    %c0_8 = arith.constant 0 : index
    %6 = vector.load %arg3[%c0_6, %c0_7, %c0_8] : memref<5x128x128xf32, #tpu.memory_space<vmem>>, vector<1x128x128xf32>
    %7 = vector.shape_cast %6 : vector<1x128x128xf32> to vector<128x128xf32>
    %cst_9 = arith.constant dense<0.000000e+00> : vector<25x128xf32>
    %8 = tpu.matmul %5, %7, %cst_9 {dimension_numbers = #tpu.dot_dimension_numbers<[1], [0], [0], [1], [0, 0, 1, 1], [], []>} : vector<25x128xf32>, vector<128x128xf32>, vector<25x128xf32> -> vector<25x128xf32>
    %9 = arith.addf %2, %8 : vector<25x128xf32>
    %c1 = arith.constant 1 : index
    %c0_10 = arith.constant 0 : index
    %c0_11 = arith.constant 0 : index
    %10 = vector.load %arg2[%c1, %c0_10, %c0_11] : memref<5x25x64xf32, #tpu.memory_space<vmem>>, vector<1x25x64xf32>
    %11 = vector.shape_cast %10 : vector<1x25x64xf32> to vector<25x64xf32>
    %cst_12 = arith.constant dense<0.000000e+00> : vector<25x128xf32>
    %12 = tpu.matmul %11, %1, %cst_12 {dimension_numbers = #tpu.dot_dimension_numbers<[1], [0], [0], [1], [0, 0, 1, 1], [], []>} : vector<25x64xf32>, vector<64x128xf32>, vector<25x128xf32> -> vector<25x128xf32>
    %c1_13 = arith.constant 1 : index
    %c0_14 = arith.constant 0 : index
    %c0_15 = arith.constant 0 : index
    %13 = vector.load %arg3[%c1_13, %c0_14, %c0_15] : memref<5x128x128xf32, #tpu.memory_space<vmem>>, vector<1x128x128xf32>
    %14 = vector.shape_cast %13 : vector<1x128x128xf32> to vector<128x128xf32>
    %cst_16 = arith.constant dense<0.000000e+00> : vector<25x128xf32>
    %15 = tpu.matmul %12, %14, %cst_16 {dimension_numbers = #tpu.dot_dimension_numbers<[1], [0], [0], [1], [0, 0, 1, 1], [], []>} : vector<25x128xf32>, vector<128x128xf32>, vector<25x128xf32> -> vector<25x128xf32>
    %16 = arith.addf %9, %15 : vector<25x128xf32>
    %c2 = arith.constant 2 : index
    %c0_17 = arith.constant 0 : index
    %c0_18 = arith.constant 0 : index
    %17 = vector.load %arg2[%c2, %c0_17, %c0_18] : memref<5x25x64xf32, #tpu.memory_space<vmem>>, vector<1x25x64xf32>
    %18 = vector.shape_cast %17 : vector<1x25x64xf32> to vector<25x64xf32>
    %cst_19 = arith.constant dense<0.000000e+00> : vector<25x128xf32>
    %19 = tpu.matmul %18, %1, %cst_19 {dimension_numbers = #tpu.dot_dimension_numbers<[1], [0], [0], [1], [0, 0, 1, 1], [], []>} : vector<25x64xf32>, vector<64x128xf32>, vector<25x128xf32> -> vector<25x128xf32>
    %c2_20 = arith.constant 2 : index
    %c0_21 = arith.constant 0 : index
    %c0_22 = arith.constant 0 : index
    %20 = vector.load %arg3[%c2_20, %c0_21, %c0_22] : memref<5x128x128xf32, #tpu.memory_space<vmem>>, vector<1x128x128xf32>
    %21 = vector.shape_cast %20 : vector<1x128x128xf32> to vector<128x128xf32>
    %cst_23 = arith.constant dense<0.000000e+00> : vector<25x128xf32>
    %22 = tpu.matmul %19, %21, %cst_23 {dimension_numbers = #tpu.dot_dimension_numbers<[1], [0], [0], [1], [0, 0, 1, 1], [], []>} : vector<25x128xf32>, vector<128x128xf32>, vector<25x128xf32> -> vector<25x128xf32>
    %23 = arith.addf %16, %22 : vector<25x128xf32>
    %c3 = arith.constant 3 : index
    %c0_24 = arith.constant 0 : index
    %c0_25 = arith.constant 0 : index
    %24 = vector.load %arg2[%c3, %c0_24, %c0_25] : memref<5x25x64xf32, #tpu.memory_space<vmem>>, vector<1x25x64xf32>
    %25 = vector.shape_cast %24 : vector<1x25x64xf32> to vector<25x64xf32>
    %cst_26 = arith.constant dense<0.000000e+00> : vector<25x128xf32>
    %26 = tpu.matmul %25, %1, %cst_26 {dimension_numbers = #tpu.dot_dimension_numbers<[1], [0], [0], [1], [0, 0, 1, 1], [], []>} : vector<25x64xf32>, vector<64x128xf32>, vector<25x128xf32> -> vector<25x128xf32>
    %c3_27 = arith.constant 3 : index
    %c0_28 = arith.constant 0 : index
    %c0_29 = arith.constant 0 : index
    %27 = vector.load %arg3[%c3_27, %c0_28, %c0_29] : memref<5x128x128xf32, #tpu.memory_space<vmem>>, vector<1x128x128xf32>
    %28 = vector.shape_cast %27 : vector<1x128x128xf32> to vector<128x128xf32>
    %cst_30 = arith.constant dense<0.000000e+00> : vector<25x128xf32>
    %29 = tpu.matmul %26, %28, %cst_30 {dimension_numbers = #tpu.dot_dimension_numbers<[1], [0], [0], [1], [0, 0, 1, 1], [], []>} : vector<25x128xf32>, vector<128x128xf32>, vector<25x128xf32> -> vector<25x128xf32>
    %30 = arith.addf %23, %29 : vector<25x128xf32>
    %c4 = arith.constant 4 : index
    %c0_31 = arith.constant 0 : index
    %c0_32 = arith.constant 0 : index
    %31 = vector.load %arg2[%c4, %c0_31, %c0_32] : memref<5x25x64xf32, #tpu.memory_space<vmem>>, vector<1x25x64xf32>
    %32 = vector.shape_cast %31 : vector<1x25x64xf32> to vector<25x64xf32>
    %cst_33 = arith.constant dense<0.000000e+00> : vector<25x128xf32>
    %33 = tpu.matmul %32, %1, %cst_33 {dimension_numbers = #tpu.dot_dimension_numbers<[1], [0], [0], [1], [0, 0, 1, 1], [], []>} : vector<25x64xf32>, vector<64x128xf32>, vector<25x128xf32> -> vector<25x128xf32>
    %c4_34 = arith.constant 4 : index
    %c0_35 = arith.constant 0 : index
    %c0_36 = arith.constant 0 : index
    %34 = vector.load %arg3[%c4_34, %c0_35, %c0_36] : memref<5x128x128xf32, #tpu.memory_space<vmem>>, vector<1x128x128xf32>
    %35 = vector.shape_cast %34 : vector<1x128x128xf32> to vector<128x128xf32>
    %cst_37 = arith.constant dense<0.000000e+00> : vector<25x128xf32>
    %36 = tpu.matmul %33, %35, %cst_37 {dimension_numbers = #tpu.dot_dimension_numbers<[1], [0], [0], [1], [0, 0, 1, 1], [], []>} : vector<25x128xf32>, vector<128x128xf32>, vector<25x128xf32> -> vector<25x128xf32>
    %37 = arith.addf %30, %36 : vector<25x128xf32>
    %c0_38 = arith.constant 0 : index
    %c0_39 = arith.constant 0 : index
    %38 = vector.load %arg4[%c0_38, %c0_39] : memref<1x128xf32, #tpu.memory_space<vmem>>, vector<1x128xf32>
    %39 = vector.broadcast %38 : vector<1x128xf32> to vector<25x128xf32>
    %40 = arith.addf %37, %39 : vector<25x128xf32>
    %cst_40 = arith.constant 0.000000e+00 : f32
    %41 = vector.broadcast %cst_40 : f32 to vector<25x128xf32>
    %42 = arith.maximumf %40, %41 : vector<25x128xf32>
    %cst_41 = arith.constant 0.000000e+00 : f32
    %43 = vector.broadcast %cst_41 : f32 to vector<13x128xf32>
    %c0_42 = arith.constant 0 : index
    %c0_43 = arith.constant 0 : index
    %c0_44 = arith.constant 0 : index
    %44 = vector.load %arg5[%c0_42, %c0_43, %c0_44] : memref<3x13x25xf32, #tpu.memory_space<vmem>>, vector<1x13x25xf32>
    %45 = vector.shape_cast %44 : vector<1x13x25xf32> to vector<13x25xf32>
    %cst_45 = arith.constant dense<0.000000e+00> : vector<13x128xf32>
    %46 = tpu.matmul %45, %42, %cst_45 {dimension_numbers = #tpu.dot_dimension_numbers<[1], [0], [0], [1], [0, 0, 1, 1], [], []>} : vector<13x25xf32>, vector<25x128xf32>, vector<13x128xf32> -> vector<13x128xf32>
    %c0_46 = arith.constant 0 : index
    %c0_47 = arith.constant 0 : index
    %c0_48 = arith.constant 0 : index
    %47 = vector.load %arg6[%c0_46, %c0_47, %c0_48] : memref<3x128x128xf32, #tpu.memory_space<vmem>>, vector<1x128x128xf32>
    %48 = vector.shape_cast %47 : vector<1x128x128xf32> to vector<128x128xf32>
    %cst_49 = arith.constant dense<0.000000e+00> : vector<13x128xf32>
    %49 = tpu.matmul %46, %48, %cst_49 {dimension_numbers = #tpu.dot_dimension_numbers<[1], [0], [0], [1], [0, 0, 1, 1], [], []>} : vector<13x128xf32>, vector<128x128xf32>, vector<13x128xf32> -> vector<13x128xf32>
    %50 = arith.addf %43, %49 : vector<13x128xf32>
    %c1_50 = arith.constant 1 : index
    %c0_51 = arith.constant 0 : index
    %c0_52 = arith.constant 0 : index
    %51 = vector.load %arg5[%c1_50, %c0_51, %c0_52] : memref<3x13x25xf32, #tpu.memory_space<vmem>>, vector<1x13x25xf32>
    %52 = vector.shape_cast %51 : vector<1x13x25xf32> to vector<13x25xf32>
    %cst_53 = arith.constant dense<0.000000e+00> : vector<13x128xf32>
    %53 = tpu.matmul %52, %42, %cst_53 {dimension_numbers = #tpu.dot_dimension_numbers<[1], [0], [0], [1], [0, 0, 1, 1], [], []>} : vector<13x25xf32>, vector<25x128xf32>, vector<13x128xf32> -> vector<13x128xf32>
    %c1_54 = arith.constant 1 : index
    %c0_55 = arith.constant 0 : index
    %c0_56 = arith.constant 0 : index
    %54 = vector.load %arg6[%c1_54, %c0_55, %c0_56] : memref<3x128x128xf32, #tpu.memory_space<vmem>>, vector<1x128x128xf32>
    %55 = vector.shape_cast %54 : vector<1x128x128xf32> to vector<128x128xf32>
    %cst_57 = arith.constant dense<0.000000e+00> : vector<13x128xf32>
    %56 = tpu.matmul %53, %55, %cst_57 {dimension_numbers = #tpu.dot_dimension_numbers<[1], [0], [0], [1], [0, 0, 1, 1], [], []>} : vector<13x128xf32>, vector<128x128xf32>, vector<13x128xf32> -> vector<13x128xf32>
    %57 = arith.addf %50, %56 : vector<13x128xf32>
    %c2_58 = arith.constant 2 : index
    %c0_59 = arith.constant 0 : index
    %c0_60 = arith.constant 0 : index
    %58 = vector.load %arg5[%c2_58, %c0_59, %c0_60] : memref<3x13x25xf32, #tpu.memory_space<vmem>>, vector<1x13x25xf32>
    %59 = vector.shape_cast %58 : vector<1x13x25xf32> to vector<13x25xf32>
    %cst_61 = arith.constant dense<0.000000e+00> : vector<13x128xf32>
    %60 = tpu.matmul %59, %42, %cst_61 {dimension_numbers = #tpu.dot_dimension_numbers<[1], [0], [0], [1], [0, 0, 1, 1], [], []>} : vector<13x25xf32>, vector<25x128xf32>, vector<13x128xf32> -> vector<13x128xf32>
    %c2_62 = arith.constant 2 : index
    %c0_63 = arith.constant 0 : index
    %c0_64 = arith.constant 0 : index
    %61 = vector.load %arg6[%c2_62, %c0_63, %c0_64] : memref<3x128x128xf32, #tpu.memory_space<vmem>>, vector<1x128x128xf32>
    %62 = vector.shape_cast %61 : vector<1x128x128xf32> to vector<128x128xf32>
    %cst_65 = arith.constant dense<0.000000e+00> : vector<13x128xf32>
    %63 = tpu.matmul %60, %62, %cst_65 {dimension_numbers = #tpu.dot_dimension_numbers<[1], [0], [0], [1], [0, 0, 1, 1], [], []>} : vector<13x128xf32>, vector<128x128xf32>, vector<13x128xf32> -> vector<13x128xf32>
    %64 = arith.addf %57, %63 : vector<13x128xf32>
    %c0_66 = arith.constant 0 : index
    %c0_67 = arith.constant 0 : index
    %65 = vector.load %arg7[%c0_66, %c0_67] : memref<1x128xf32, #tpu.memory_space<vmem>>, vector<1x128xf32>
    %66 = vector.broadcast %65 : vector<1x128xf32> to vector<13x128xf32>
    %67 = arith.addf %64, %66 : vector<13x128xf32>
    %cst_68 = arith.constant 0.000000e+00 : f32
    %68 = vector.broadcast %cst_68 : f32 to vector<13x128xf32>
    %69 = arith.maximumf %67, %68 : vector<13x128xf32>
    %cst_69 = arith.constant 0.000000e+00 : f32
    %70 = vector.broadcast %cst_69 : f32 to vector<1x128xf32>
    %71 = vector.extract_strided_slice %69 {offsets = [0, 0], sizes = [1, 128], strides = [1, 1]} : vector<13x128xf32> to vector<1x128xf32>
    %c0_70 = arith.constant 0 : index
    %c0_71 = arith.constant 0 : index
    %c0_72 = arith.constant 0 : index
    %72 = vector.load %arg8[%c0_70, %c0_71, %c0_72] : memref<13x128x128xf32, #tpu.memory_space<vmem>>, vector<1x128x128xf32>
    %73 = vector.shape_cast %72 : vector<1x128x128xf32> to vector<128x128xf32>
    %cst_73 = arith.constant dense<0.000000e+00> : vector<1x128xf32>
    %74 = tpu.matmul %71, %73, %cst_73 {dimension_numbers = #tpu.dot_dimension_numbers<[1], [0], [0], [1], [0, 0, 1, 1], [], []>} : vector<1x128xf32>, vector<128x128xf32>, vector<1x128xf32> -> vector<1x128xf32>
    %75 = arith.addf %70, %74 : vector<1x128xf32>
    %76 = vector.extract_strided_slice %69 {offsets = [1, 0], sizes = [1, 128], strides = [1, 1]} : vector<13x128xf32> to vector<1x128xf32>
    %c1_74 = arith.constant 1 : index
    %c0_75 = arith.constant 0 : index
    %c0_76 = arith.constant 0 : index
    %77 = vector.load %arg8[%c1_74, %c0_75, %c0_76] : memref<13x128x128xf32, #tpu.memory_space<vmem>>, vector<1x128x128xf32>
    %78 = vector.shape_cast %77 : vector<1x128x128xf32> to vector<128x128xf32>
    %cst_77 = arith.constant dense<0.000000e+00> : vector<1x128xf32>
    %79 = tpu.matmul %76, %78, %cst_77 {dimension_numbers = #tpu.dot_dimension_numbers<[1], [0], [0], [1], [0, 0, 1, 1], [], []>} : vector<1x128xf32>, vector<128x128xf32>, vector<1x128xf32> -> vector<1x128xf32>
    %80 = arith.addf %75, %79 : vector<1x128xf32>
    %81 = vector.extract_strided_slice %69 {offsets = [2, 0], sizes = [1, 128], strides = [1, 1]} : vector<13x128xf32> to vector<1x128xf32>
    %c2_78 = arith.constant 2 : index
    %c0_79 = arith.constant 0 : index
    %c0_80 = arith.constant 0 : index
    %82 = vector.load %arg8[%c2_78, %c0_79, %c0_80] : memref<13x128x128xf32, #tpu.memory_space<vmem>>, vector<1x128x128xf32>
    %83 = vector.shape_cast %82 : vector<1x128x128xf32> to vector<128x128xf32>
    %cst_81 = arith.constant dense<0.000000e+00> : vector<1x128xf32>
    %84 = tpu.matmul %81, %83, %cst_81 {dimension_numbers = #tpu.dot_dimension_numbers<[1], [0], [0], [1], [0, 0, 1, 1], [], []>} : vector<1x128xf32>, vector<128x128xf32>, vector<1x128xf32> -> vector<1x128xf32>
    %85 = arith.addf %80, %84 : vector<1x128xf32>
    %86 = vector.extract_strided_slice %69 {offsets = [3, 0], sizes = [1, 128], strides = [1, 1]} : vector<13x128xf32> to vector<1x128xf32>
    %c3_82 = arith.constant 3 : index
    %c0_83 = arith.constant 0 : index
    %c0_84 = arith.constant 0 : index
    %87 = vector.load %arg8[%c3_82, %c0_83, %c0_84] : memref<13x128x128xf32, #tpu.memory_space<vmem>>, vector<1x128x128xf32>
    %88 = vector.shape_cast %87 : vector<1x128x128xf32> to vector<128x128xf32>
    %cst_85 = arith.constant dense<0.000000e+00> : vector<1x128xf32>
    %89 = tpu.matmul %86, %88, %cst_85 {dimension_numbers = #tpu.dot_dimension_numbers<[1], [0], [0], [1], [0, 0, 1, 1], [], []>} : vector<1x128xf32>, vector<128x128xf32>, vector<1x128xf32> -> vector<1x128xf32>
    %90 = arith.addf %85, %89 : vector<1x128xf32>
    %91 = vector.extract_strided_slice %69 {offsets = [4, 0], sizes = [1, 128], strides = [1, 1]} : vector<13x128xf32> to vector<1x128xf32>
    %c4_86 = arith.constant 4 : index
    %c0_87 = arith.constant 0 : index
    %c0_88 = arith.constant 0 : index
    %92 = vector.load %arg8[%c4_86, %c0_87, %c0_88] : memref<13x128x128xf32, #tpu.memory_space<vmem>>, vector<1x128x128xf32>
    %93 = vector.shape_cast %92 : vector<1x128x128xf32> to vector<128x128xf32>
    %cst_89 = arith.constant dense<0.000000e+00> : vector<1x128xf32>
    %94 = tpu.matmul %91, %93, %cst_89 {dimension_numbers = #tpu.dot_dimension_numbers<[1], [0], [0], [1], [0, 0, 1, 1], [], []>} : vector<1x128xf32>, vector<128x128xf32>, vector<1x128xf32> -> vector<1x128xf32>
    %95 = arith.addf %90, %94 : vector<1x128xf32>
    %96 = vector.extract_strided_slice %69 {offsets = [5, 0], sizes = [1, 128], strides = [1, 1]} : vector<13x128xf32> to vector<1x128xf32>
    %c5 = arith.constant 5 : index
    %c0_90 = arith.constant 0 : index
    %c0_91 = arith.constant 0 : index
    %97 = vector.load %arg8[%c5, %c0_90, %c0_91] : memref<13x128x128xf32, #tpu.memory_space<vmem>>, vector<1x128x128xf32>
    %98 = vector.shape_cast %97 : vector<1x128x128xf32> to vector<128x128xf32>
    %cst_92 = arith.constant dense<0.000000e+00> : vector<1x128xf32>
    %99 = tpu.matmul %96, %98, %cst_92 {dimension_numbers = #tpu.dot_dimension_numbers<[1], [0], [0], [1], [0, 0, 1, 1], [], []>} : vector<1x128xf32>, vector<128x128xf32>, vector<1x128xf32> -> vector<1x128xf32>
    %100 = arith.addf %95, %99 : vector<1x128xf32>
    %101 = vector.extract_strided_slice %69 {offsets = [6, 0], sizes = [1, 128], strides = [1, 1]} : vector<13x128xf32> to vector<1x128xf32>
    %c6 = arith.constant 6 : index
    %c0_93 = arith.constant 0 : index
    %c0_94 = arith.constant 0 : index
    %102 = vector.load %arg8[%c6, %c0_93, %c0_94] : memref<13x128x128xf32, #tpu.memory_space<vmem>>, vector<1x128x128xf32>
    %103 = vector.shape_cast %102 : vector<1x128x128xf32> to vector<128x128xf32>
    %cst_95 = arith.constant dense<0.000000e+00> : vector<1x128xf32>
    %104 = tpu.matmul %101, %103, %cst_95 {dimension_numbers = #tpu.dot_dimension_numbers<[1], [0], [0], [1], [0, 0, 1, 1], [], []>} : vector<1x128xf32>, vector<128x128xf32>, vector<1x128xf32> -> vector<1x128xf32>
    %105 = arith.addf %100, %104 : vector<1x128xf32>
    %106 = vector.extract_strided_slice %69 {offsets = [7, 0], sizes = [1, 128], strides = [1, 1]} : vector<13x128xf32> to vector<1x128xf32>
    %c7 = arith.constant 7 : index
    %c0_96 = arith.constant 0 : index
    %c0_97 = arith.constant 0 : index
    %107 = vector.load %arg8[%c7, %c0_96, %c0_97] : memref<13x128x128xf32, #tpu.memory_space<vmem>>, vector<1x128x128xf32>
    %108 = vector.shape_cast %107 : vector<1x128x128xf32> to vector<128x128xf32>
    %cst_98 = arith.constant dense<0.000000e+00> : vector<1x128xf32>
    %109 = tpu.matmul %106, %108, %cst_98 {dimension_numbers = #tpu.dot_dimension_numbers<[1], [0], [0], [1], [0, 0, 1, 1], [], []>} : vector<1x128xf32>, vector<128x128xf32>, vector<1x128xf32> -> vector<1x128xf32>
    %110 = arith.addf %105, %109 : vector<1x128xf32>
    %111 = vector.extract_strided_slice %69 {offsets = [8, 0], sizes = [1, 128], strides = [1, 1]} : vector<13x128xf32> to vector<1x128xf32>
    %c8 = arith.constant 8 : index
    %c0_99 = arith.constant 0 : index
    %c0_100 = arith.constant 0 : index
    %112 = vector.load %arg8[%c8, %c0_99, %c0_100] : memref<13x128x128xf32, #tpu.memory_space<vmem>>, vector<1x128x128xf32>
    %113 = vector.shape_cast %112 : vector<1x128x128xf32> to vector<128x128xf32>
    %cst_101 = arith.constant dense<0.000000e+00> : vector<1x128xf32>
    %114 = tpu.matmul %111, %113, %cst_101 {dimension_numbers = #tpu.dot_dimension_numbers<[1], [0], [0], [1], [0, 0, 1, 1], [], []>} : vector<1x128xf32>, vector<128x128xf32>, vector<1x128xf32> -> vector<1x128xf32>
    %115 = arith.addf %110, %114 : vector<1x128xf32>
    %116 = vector.extract_strided_slice %69 {offsets = [9, 0], sizes = [1, 128], strides = [1, 1]} : vector<13x128xf32> to vector<1x128xf32>
    %c9 = arith.constant 9 : index
    %c0_102 = arith.constant 0 : index
    %c0_103 = arith.constant 0 : index
    %117 = vector.load %arg8[%c9, %c0_102, %c0_103] : memref<13x128x128xf32, #tpu.memory_space<vmem>>, vector<1x128x128xf32>
    %118 = vector.shape_cast %117 : vector<1x128x128xf32> to vector<128x128xf32>
    %cst_104 = arith.constant dense<0.000000e+00> : vector<1x128xf32>
    %119 = tpu.matmul %116, %118, %cst_104 {dimension_numbers = #tpu.dot_dimension_numbers<[1], [0], [0], [1], [0, 0, 1, 1], [], []>} : vector<1x128xf32>, vector<128x128xf32>, vector<1x128xf32> -> vector<1x128xf32>
    %120 = arith.addf %115, %119 : vector<1x128xf32>
    %121 = vector.extract_strided_slice %69 {offsets = [10, 0], sizes = [1, 128], strides = [1, 1]} : vector<13x128xf32> to vector<1x128xf32>
    %c10 = arith.constant 10 : index
    %c0_105 = arith.constant 0 : index
    %c0_106 = arith.constant 0 : index
    %122 = vector.load %arg8[%c10, %c0_105, %c0_106] : memref<13x128x128xf32, #tpu.memory_space<vmem>>, vector<1x128x128xf32>
    %123 = vector.shape_cast %122 : vector<1x128x128xf32> to vector<128x128xf32>
    %cst_107 = arith.constant dense<0.000000e+00> : vector<1x128xf32>
    %124 = tpu.matmul %121, %123, %cst_107 {dimension_numbers = #tpu.dot_dimension_numbers<[1], [0], [0], [1], [0, 0, 1, 1], [], []>} : vector<1x128xf32>, vector<128x128xf32>, vector<1x128xf32> -> vector<1x128xf32>
    %125 = arith.addf %120, %124 : vector<1x128xf32>
    %126 = vector.extract_strided_slice %69 {offsets = [11, 0], sizes = [1, 128], strides = [1, 1]} : vector<13x128xf32> to vector<1x128xf32>
    %c11 = arith.constant 11 : index
    %c0_108 = arith.constant 0 : index
    %c0_109 = arith.constant 0 : index
    %127 = vector.load %arg8[%c11, %c0_108, %c0_109] : memref<13x128x128xf32, #tpu.memory_space<vmem>>, vector<1x128x128xf32>
    %128 = vector.shape_cast %127 : vector<1x128x128xf32> to vector<128x128xf32>
    %cst_110 = arith.constant dense<0.000000e+00> : vector<1x128xf32>
    %129 = tpu.matmul %126, %128, %cst_110 {dimension_numbers = #tpu.dot_dimension_numbers<[1], [0], [0], [1], [0, 0, 1, 1], [], []>} : vector<1x128xf32>, vector<128x128xf32>, vector<1x128xf32> -> vector<1x128xf32>
    %130 = arith.addf %125, %129 : vector<1x128xf32>
    %131 = vector.extract_strided_slice %69 {offsets = [12, 0], sizes = [1, 128], strides = [1, 1]} : vector<13x128xf32> to vector<1x128xf32>
    %c12 = arith.constant 12 : index
    %c0_111 = arith.constant 0 : index
    %c0_112 = arith.constant 0 : index
    %132 = vector.load %arg8[%c12, %c0_111, %c0_112] : memref<13x128x128xf32, #tpu.memory_space<vmem>>, vector<1x128x128xf32>
    %133 = vector.shape_cast %132 : vector<1x128x128xf32> to vector<128x128xf32>
    %cst_113 = arith.constant dense<0.000000e+00> : vector<1x128xf32>
    %134 = tpu.matmul %131, %133, %cst_113 {dimension_numbers = #tpu.dot_dimension_numbers<[1], [0], [0], [1], [0, 0, 1, 1], [], []>} : vector<1x128xf32>, vector<128x128xf32>, vector<1x128xf32> -> vector<1x128xf32>
    %135 = arith.addf %130, %134 : vector<1x128xf32>
    %c0_114 = arith.constant 0 : index
    %c0_115 = arith.constant 0 : index
    %136 = vector.load %arg9[%c0_114, %c0_115] : memref<1x128xf32, #tpu.memory_space<vmem>>, vector<1x128xf32>
    %137 = arith.addf %135, %136 : vector<1x128xf32>
    %cst_116 = arith.constant 0.000000e+00 : f32
    %138 = vector.broadcast %cst_116 : f32 to vector<1x128xf32>
    %139 = arith.maximumf %137, %138 : vector<1x128xf32>
    %c0_117 = arith.constant 0 : index
    %c0_118 = arith.constant 0 : index
    %140 = vector.load %arg10[%c0_117, %c0_118] : memref<128x2xf32, #tpu.memory_space<vmem>>, vector<128x2xf32>
    %cst_119 = arith.constant dense<0.000000e+00> : vector<1x2xf32>
    %141 = tpu.matmul %139, %140, %cst_119 {dimension_numbers = #tpu.dot_dimension_numbers<[1], [0], [0], [1], [0, 0, 1, 1], [], []>} : vector<1x128xf32>, vector<128x2xf32>, vector<1x2xf32> -> vector<1x2xf32>
    %c0_120 = arith.constant 0 : index
    %c0_121 = arith.constant 0 : index
    %142 = vector.load %arg11[%c0_120, %c0_121] : memref<1x2xf32, #tpu.memory_space<vmem>>, vector<1x2xf32>
    %143 = arith.addf %141, %142 : vector<1x2xf32>
    %c0_122 = arith.constant 0 : index
    %c0_123 = arith.constant 0 : index
    %c0_124 = arith.constant 0 : index
    %144 = vector.load %arg12[%c0_122, %c0_123, %c0_124] : memref<1x1x2xf32, #tpu.memory_space<vmem>>, vector<1x1x2xf32>
    %145 = vector.shape_cast %144 : vector<1x1x2xf32> to vector<1x2xf32>
    %146 = vector.shape_cast %143 : vector<1x2xf32> to vector<1x1x2xf32>
    tpu.vector_store %arg12[%c0_122, %c0_123, %c0_124], %146 {strides = array<i32>} : memref<1x1x2xf32, #tpu.memory_space<vmem>>, vector<1x1x2xf32>,
    return
  }
  func.func @transform_0(%arg0: i32) -> (i32, i32, i32) {
    %c0_i32 = arith.constant 0 : i32
    %c0_i32_0 = arith.constant 0 : i32
    %c0_i32_1 = arith.constant 0 : i32
    return %arg0, %c0_i32, %c0_i32_0 : i32, i32, i32
  }
  func.func @transform_1(%arg0: i32) -> (i32, i32, i32) {
    %c0_i32 = arith.constant 0 : i32
    %c0_i32_0 = arith.constant 0 : i32
    %c0_i32_1 = arith.constant 0 : i32
    %c0_i32_2 = arith.constant 0 : i32
    return %c0_i32, %c0_i32_0, %c0_i32_1 : i32, i32, i32
  }
  func.func @transform_2(%arg0: i32) -> (i32, i32, i32) {
    %c0_i32 = arith.constant 0 : i32
    %c0_i32_0 = arith.constant 0 : i32
    %c0_i32_1 = arith.constant 0 : i32
    %c0_i32_2 = arith.constant 0 : i32
    return %c0_i32, %c0_i32_0, %c0_i32_1 : i32, i32, i32
  }
  func.func @transform_3(%arg0: i32) -> (i32, i32) {
    %c0_i32 = arith.constant 0 : i32
    %c0_i32_0 = arith.constant 0 : i32
    %c0_i32_1 = arith.constant 0 : i32
    return %c0_i32, %c0_i32_0 : i32, i32
  }
  func.func @transform_4(%arg0: i32) -> (i32, i32, i32) {
    %c0_i32 = arith.constant 0 : i32
    %c0_i32_0 = arith.constant 0 : i32
    %c0_i32_1 = arith.constant 0 : i32
    %c0_i32_2 = arith.constant 0 : i32
    return %c0_i32, %c0_i32_0, %c0_i32_1 : i32, i32, i32
  }
  func.func @transform_5(%arg0: i32) -> (i32, i32, i32) {
    %c0_i32 = arith.constant 0 : i32
    %c0_i32_0 = arith.constant 0 : i32
    %c0_i32_1 = arith.constant 0 : i32
    %c0_i32_2 = arith.constant 0 : i32
    return %c0_i32, %c0_i32_0, %c0_i32_1 : i32, i32, i32
  }
  func.func @transform_6(%arg0: i32) -> (i32, i32) {
    %c0_i32 = arith.constant 0 : i32
    %c0_i32_0 = arith.constant 0 : i32
    %c0_i32_1 = arith.constant 0 : i32
    return %c0_i32, %c0_i32_0 : i32, i32
  }
  func.func @transform_7(%arg0: i32) -> (i32, i32, i32) {
    %c0_i32 = arith.constant 0 : i32
    %c0_i32_0 = arith.constant 0 : i32
    %c0_i32_1 = arith.constant 0 : i32
    %c0_i32_2 = arith.constant 0 : i32
    return %c0_i32, %c0_i32_0, %c0_i32_1 : i32, i32, i32
  }
  func.func @transform_8(%arg0: i32) -> (i32, i32) {
    %c0_i32 = arith.constant 0 : i32
    %c0_i32_0 = arith.constant 0 : i32
    %c0_i32_1 = arith.constant 0 : i32
    return %c0_i32, %c0_i32_0 : i32, i32
  }
  func.func @transform_9(%arg0: i32) -> (i32, i32) {
    %c0_i32 = arith.constant 0 : i32
    %c0_i32_0 = arith.constant 0 : i32
    %c0_i32_1 = arith.constant 0 : i32
    return %c0_i32, %c0_i32_0 : i32, i32
  }
  func.func @transform_10(%arg0: i32) -> (i32, i32) {
    %c0_i32 = arith.constant 0 : i32
    %c0_i32_0 = arith.constant 0 : i32
    %c0_i32_1 = arith.constant 0 : i32
    return %c0_i32, %c0_i32_0 : i32, i32
  }
  func.func @transform_11(%arg0: i32) -> (i32, i32, i32) {
    %c0_i32 = arith.constant 0 : i32
    %c0_i32_0 = arith.constant 0 : i32
    %c0_i32_1 = arith.constant 0 : i32
    return %arg0, %c0_i32, %c0_i32_0 : i32, i32, i32
  }
}

</mosaic_0001>

<bundles_post_ra>
// kernel: convnet_forward.1
= control target key start
LH: loop header
LB: loop body
LE: loop exit
PB: predicated region body
PF: predicated region fallthrough
CT: control target
= control target key end

     0   :  { %s7308_s0 = inlined_call_operand.vmem [shape: f32[2,64,128], index: 0, kind: input, shape index: {}]   ;;  %s7309_s1 = inlined_call_operand.vmem [shape: f32[5,25,64], index: 1, kind: input, shape index: {}]   ;;  %s7310_s2 = inlined_call_operand.hbm [shape: f32[5,128,128], index: 2, kind: input, shape index: {}]   ;;  %s7311_s3 = inlined_call_operand.vmem [shape: f32[1,128], index: 3, kind: input, shape index: {}]   ;;  %s7312_s4 = inlined_call_operand.hbm [shape: f32[3,13,25], index: 4, kind: input, shape index: {}]   ;;  %s7313_s5 = inlined_call_operand.hbm [shape: f32[3,128,128], index: 5, kind: input, shape index: {}]   ;;  %s7314_s6 = inlined_call_operand.vmem [shape: f32[1,128], index: 6, kind: input, shape index: {}]   ;;  %s7315_s7 = inlined_call_operand.vmem [shape: f32[13,128,128], index: 7, kind: input, shape index: {}]   ;;  %s7316_s8 = inlined_call_operand.vmem [shape: f32[1,128], index: 8, kind: input, shape index: {}]   ;;  %s7317_s9 = inlined_call_operand.vmem [shape: f32[128,2], index: 9, kind: input, shape index: {}]   ;;  %s7318_s10 = inlined_call_operand.vmem [shape: f32[1,2], index: 10, kind: input, shape index: {}]   ;;  %s7319_s11 = inlined_call_operand.hbm [shape: f32[2,1,2], index: 11, kind: output, shape index: {}]  }
   0x1   :  { %7330 = sst [smem:[#allocation18_spill]] %s7319_s11 }
   0x2   :  { %16 = vsyncpa [#allocation3], 0 }
   0x3   :  { %17 = vsyncpa [#allocation6], 0 }
   0x4   :  { %18 = vsyncpa [#allocation4], 0 }
   0x5   :  { %20 = vsyncpa [#allocation4 + $0x1], 0  ;;  %s6059_s17 = smov 0   ;;  %s6061_s18 = smov 0  }
   0x6   :  { %s6063_s19 = smov 0   ;;  %s6065_s20 = smov 0  }
   0x7 LB: > { %7331 = sst [smem:[#allocation12_spill]] %s5975_s17  ;;  %s6080_s21 = sadd.s32 4294967295, %s5987_s20   ;;  %s5987_s20 = sphi %s6065_s20, %s7355_s20   ;;  %s5983_s19 = sphi %s6063_s19, %s7357_s19   ;;  %s5979_s18 = sphi %s6061_s18, %s7359_s18   ;;  %s5975_s17 = sphi %s6059_s17, %s7358_s17  }
   0x8   : > { %7332 = sst [smem:[#allocation13_spill]] %s5983_s19  ;;  %s3382_s22 = sadd.s32 4294967294, %s5987_s20  }
   0x9   : > { %7333 = sst [smem:[#allocation14_spill]] %s5987_s20  ;;  %s6084_s23 = sadd.s32 1, %s5987_s20  }
   0xa   : > { %7334 = sst [smem:[#allocation15_spill]] %s6084_s23  ;;  %s269_s24 = sadd.s32 1, %s5983_s19 }
   0xb   : > { %s266_s25 = ssub.s32 %s5987_s20, %s6084_s23  ;;  %p279_p0 = scmp.ne.s32.totalorder %s5983_s19, %s5979_s18 }
   0xc   : > { %p267_p1 = scmp.eq.s32.totalorder %s266_s25, 0  ;;  %p280_p2 = scmp.eq.s32.totalorder %s6080_s21, 1 }
   0xd   : > { %p285_p3 = scmp.ne.s32.totalorder %s5979_s18, %s5975_s17  ;;  %p286_p4 = scmp.eq.s32.totalorder %s3382_s22, 1 }
   0xe   : > { %s6095_s26 = scalar_select %p267_p1, %s5983_s19, %s269_s24  }
   0xf   : > { %p6097_p5 = por %p280_p2, %p279_p0  ;;  %p6101_p6 = por %p286_p4, %p285_p3 }
  0x10   : > { %7335 = sst [smem:[#allocation16_spill]] %s6095_s26  ;;  %p3383_p7 = scmp.ge.s32.totalorder %s5987_s20, 1 }
  0x11   : > { %s7336_s27 = scalar_select %p6097_p5, 1, 0 }
  0x12   : > { %s7337_s28 = scalar_select %p6101_p6, 1, 0 }
  0x13   : > { %p293_p8 = scmp.lt.s32.totalorder %s5987_s20, 3  ;;  %p7323_p9 = scmp.eq.s32.totalorder %s6080_s21, 0 }
  0x14   : > { %7338 = sst [smem:[#allocation17_spill]] %s7337_s28  ;;  %s5989_s30 = smov [#allocation5]  }
  0x15   : > { %p6108_p10 = pnand %p3383_p7, %p293_p8  ;;  %s324_s12 = sshll.u32 %s5989_s30, 4  ;;  %s6114_s12 = int_to_ptr.vmem [resolvable:$true] %s324_s12 }
  0x16   : > { %s5990_s14 = smov [#allocation2]   ;;  %s5991_s16 = smov [#allocation7]  }
  0x17   : > { %s7339_s29 = scalar_select %p6108_p10, 1, 0 }
  0x18   : > { %p5771_p11 = pneg %p6108_p10  ;;  %s308_s15 = sshll.u32 %s5990_s14, 4  ;;  %s6122_s15 = int_to_ptr.vmem [resolvable:$true] %s308_s15 }
  0x19   : > { %s6124_s22 = sshll.u32 %s5991_s16, 4  ;;  %s5833_s26 = scalar_lea.hbm %s7312_s4, 768  ;;  %s338_s22 = int_to_ptr.vmem [resolvable:$true] %s6124_s22 }
  0x1a   : > { %p6118_p12 = pnand %p7323_p9, %p5771_p11  ;;  %p5834_p13 = scmp.ne.s32.totalorder %s7312_s4, %s5833_s26 }
  0x1b   : > { %p5840_p3 = scmp.lt.u32.totalorder %s5833_s26, %s7312_s4 }
  0x1c   : > { %p6134_p0 = pneg %p6118_p12 }
  0x1e   : > { %p5836_p1 = pnand %p6134_p0, %p5834_p13 }
  0x20   : > { %p5837_p2 = pneg %p5836_p1 }
  0x22   : > { %p5842_p4 = pnand %p5840_p3, %p5837_p2 }
  0x24   : > { %5845 = shalt.err (!%p5842_p4)
}
  0x25   : > { %s5846_s19 = scalar_lea.vmem %s6114_s12, 768  ;;  %p5854_p9 = scmp.lt.s32.totalorder %s6114_s12, %s6114_s12 }
  0x26   : > { %p5847_p7 = scmp.ne.s32.totalorder %s6114_s12, %s5846_s19  ;;  %p5855_p6 = scmp.lt.s32.totalorder %s5846_s19, %s5846_s19 }
  0x28   : > { %p5849_p8 = pnand %p5847_p7, %p6134_p0  ;;  %p5856_p13 = por %p5855_p6, %p5854_p9 }
  0x2a   : > { %p5850_p11 = pneg %p5849_p8 }
  0x2c   : > { %p5857_p1 = pnand %p5856_p13, %p5850_p11 }
  0x2e   : > { %5860 = shalt.err (!%p5857_p1)
}
  0x2f   : > { %s5992_s24 = smov 128   ;;  %s5993_s26 = smov 8  }
  0x30   : > { %5777 = dma.hbm_to_vmem [thread:$0]  (!%p6118_p12), %s7312_s4, 768, %s6114_s12, [#allocation6], %s5992_s24, %s5992_s24, %s5993_s26  }
  0x31   : > { %s5861_s19 = scalar_lea.hbm %s7310_s2, 10240 }
  0x32   : > { %p5862_p6 = scmp.ne.s32.totalorder %s7310_s2, %s5861_s19  ;;  %p5868_p3 = scmp.lt.u32.totalorder %s5861_s19, %s7310_s2 }
  0x34   : > { %p5864_p9 = pnand %p5862_p6, %p6134_p0 }
  0x36   : > { %p5865_p2 = pneg %p5864_p9 }
  0x38   : > { %p5870_p4 = pnand %p5868_p3, %p5865_p2 }
  0x3a   : > { %5873 = shalt.err (!%p5870_p4)
}
  0x3b   : > { %s5874_s12 = scalar_lea.vmem %s6122_s15, 10240  ;;  %p5882_p13 = scmp.lt.s32.totalorder %s6122_s15, %s6122_s15 }
  0x3c   : > { %p5875_p7 = scmp.ne.s32.totalorder %s6122_s15, %s5874_s12  ;;  %p5883_p1 = scmp.lt.s32.totalorder %s5874_s12, %s5874_s12 }
  0x3e   : > { %p5877_p8 = pnand %p5875_p7, %p6134_p0  ;;  %p5884_p6 = por %p5883_p1, %p5882_p13 }
  0x40   : > { %p5878_p11 = pneg %p5877_p8 }
  0x42   : > { %p5885_p9 = pnand %p5884_p6, %p5878_p11 }
  0x44   : > { %5888 = shalt.err (!%p5885_p9)
}
  0x45   : > { %5774 = dma.hbm_to_vmem [thread:$0]  (!%p6118_p12), %s7310_s2, 10240, %s6122_s15, [#allocation3], %s5992_s24, %s5992_s24, %s5993_s26  }
  0x46   : > { %s5889_s25 = scalar_lea.hbm %s7313_s5, 6144 }
  0x47   : > { %p5890_p2 = scmp.ne.s32.totalorder %s7313_s5, %s5889_s25  ;;  %p5896_p7 = scmp.lt.u32.totalorder %s5889_s25, %s7313_s5 }
  0x49   : > { %p5892_p3 = pnand %p5890_p2, %p6134_p0 }
  0x4b   : > { %p5893_p4 = pneg %p5892_p3 }
  0x4d   : > { %p5898_p8 = pnand %p5896_p7, %p5893_p4 }
  0x4f   : > { %5901 = shalt.err (!%p5898_p8)
}
  0x50   : > { %s5902_s12 = scalar_lea.vmem %s338_s22, 6144  ;;  %p5910_p6 = scmp.lt.s32.totalorder %s338_s22, %s338_s22 }
  0x51   : > { %p5903_p11 = scmp.ne.s32.totalorder %s338_s22, %s5902_s12  ;;  %p5911_p9 = scmp.lt.s32.totalorder %s5902_s12, %s5902_s12 }
  0x53   : > { %p5905_p13 = pnand %p5903_p11, %p6134_p0  ;;  %p5912_p5 = por %p5911_p9, %p5910_p6 }
  0x55   : > { %p5906_p1 = pneg %p5905_p13 }
  0x57   : > { %p5913_p10 = pnand %p5912_p5, %p5906_p1 }
  0x59   : > { %5916 = shalt.err (!%p5913_p10)
}
  0x5a   : > { %5780 = dma.hbm_to_vmem [thread:$0]  (!%p6118_p12), %s7313_s5, 6144, %s338_s22, [#allocation6], %s5992_s24, %s5992_s24, %s5993_s26  }
  0x5b   : > { %p7342_p2 = scmp.ne.s32.totalorder %s7339_s29, 0 }
  0x5c   : > { %p7343_p0 = scmp.eq.s32.totalorder (!%p7342_p2), %s6080_s21, 0 }
  0x5d   : > { %376 = sbr.rel (%p7342_p2) target bundleno = 2031 (0x7ef), region = 64 }
  0x64   : > { %5962 = dma.done.wait (%p7343_p0), [#allocation3], 10240   ;;  %p7344_p3 = pmov %p7343_p0 }
  0x65   : > { %p7345_p5 = pmov %p7343_p0 }
  0x66   : > { %5964 = vsyncadd (%p7344_p3), [#allocation3], 4294957056 }
  0x67   : > { %5966 = dma.done.wait (%p7345_p5), [#allocation6], 6912   ;;  %p7346_p10 = pmov %p7343_p0 }
  0x68   : > { %p423_p4 = scmp.lt.s32.totalorder %s6080_s21, 1  ;;  %vm440_vm0 = vcmask 523264   ;;  %v3398_v8 = vld [vmem:[%s7309_s1 + $0x20] sm:$0xff]  ;;  %v658_v15 = vld [vmem:[#allocation2 + $0x88] sm:$0xff]  ;;  %v659_v18 = vld [vmem:[#allocation2 + $0x90] sm:$0xff]  ;;  %vm1484_vm1 = vcmask 203776  }
  0x69   : > { %5968 = vsyncadd (%p7346_p10), [#allocation6], 4294960384  ;;  %4145 = vmatprep.mubr.msk.f32.mxu1 %vm440_vm0, %v3398_v8  ;;  %v436_v9 = vld [vmem:[%s7309_s1] sm:$0xff]  ;;  %v3399_v17 = vld [vmem:[%s7309_s1 + $0x28] sm:$0xff]  ;;  %vm1491_vm2 = vcmask 1040384   ;;  %vm5994_vm3 = vmmov 1  }
  0x6a   : > { %s424_s23 = scalar_select %p423_p4, %s6080_s21, 1  ;;  %4123 = vmatprep.mubr.msk.f32.mxu0 %vm440_vm0, %v436_v9  ;;  %v657_v14 = vld [vmem:[#allocation2 + $0x80] sm:$0xff]  ;;  %v660_v19 = vld [vmem:[#allocation2 + $0x98] sm:$0xff]  ;;  %v3400_v20 = vld [vmem:[%s7309_s1 + $0x30] sm:$0xff]  ;;  %vm5996_vm5 = vmmov 0   ;;  %vm3281_vm6 = vcmask 8192  }
  0x6b   : > { %v5067_v16 = vpack.c.bf16 %v658_v15, %v657_v14  ;;  %v437_v21 = vld [vmem:[%s7309_s1 + $0x8] sm:$0xff]  ;;  %v438_v22 = vld [vmem:[%s7309_s1 + $0x10] sm:$0xff]  ;;  %v5071_v23 = vpack.c.bf16 %v660_v19, %v659_v18  ;;  %v3401_v24 = vld [vmem:[%s7309_s1 + $0x38] sm:$0x1]  ;;  %s421_s17 = sand.u32 1, %s5979_s18   ;;  %s3633_s25 = sshll.u32 %s6080_s21, 4 }
  0x6c   : > { %s3636_s13 = sshll.u32 %s424_s23, 6  ;;  %v661_v25 = vld [vmem:[#allocation2 + $0xa0] sm:$0xff]  ;;  %v662_v26 = vld [vmem:[#allocation2 + $0xa8] sm:$0xff]  ;;  %v439_v27 = vld [vmem:[%s7309_s1 + $0x18] sm:$0x1]  ;;  %s422_s30 = scalar_lea.vmem [#allocation8], %s421_s17 }
  0x6d   : > { %s427_s24 = scalar_lea.vmem %s7308_s0, %s3636_s13  ;;  %v3406_v28 = vld [vmem:[%s7309_s1 + $0x40] sm:$0xff]  ;;  %v5075_v29 = vpack.c.bf16 %v662_v26, %v661_v25  ;;  %v663_v30 = vld [vmem:[#allocation2 + $0xb0] sm:$0xff]  ;;  %v664_v31 = vld [vmem:[#allocation2 + $0xb8] sm:$0xff]  ;;  %s3296_s14 = sshll.u32 %s422_s30, 4  ;;  %s7268_s14 = int_to_ptr.vmem [resolvable:$true] %s3296_s14 }
  0x6e   : > { %v428_v0 = vld [vmem:[%s427_s24] sm:$0xff]  ;;  %v429_v1 = vld [vmem:[%s427_s24 + $0x8] sm:$0xff]  ;;  %v430_v2 = vld [vmem:[%s427_s24 + $0x10] sm:$0xff]  ;;  %v5079_v32 = vpack.c.bf16 %v664_v31, %v663_v30  ;;  %s7349_s12 = sld [smem:[#allocation18_spill]]  ;;  %s3284_s11 = scalar_lea.sflag [#allocation4], %s421_s17 }
  0x6f   : > { %v6221_v3 = vpack.c.bf16 %v429_v1, %v428_v0  ;;  %v431_v4 = vld [vmem:[%s427_s24 + $0x18] sm:$0xff]  ;;  %v432_v6 = vld [vmem:[%s427_s24 + $0x20] sm:$0xff]  ;;  %v433_v7 = vld [vmem:[%s427_s24 + $0x28] sm:$0xff]  ;;  %s5917_s23 = scalar_lea.vmem %s7268_s14, 16  ;;  %p7350_p7 = scmp.ne.s32.totalorder %s7336_s27, 0 }
  0x70   : > { %v6223_v5 = vpack.c.bf16 %v431_v4, %v430_v2  ;;  %v6236_v10 = vpack.c.bf16 %v433_v7, %v432_v6  ;;  %v434_v11 = vld [vmem:[%s427_s24 + $0x30] sm:$0xff]  ;;  %v435_v12 = vld [vmem:[%s427_s24 + $0x38] sm:$0xff]  ;;  %v665_v33 = vld [vmem:[#allocation2 + $0xc0] sm:$0xff]  ;;  %p5918_p12 = scmp.ne.s32.totalorder %s7268_s14, %s5917_s23  ;;  %s5998_s21 = smov [#allocation8]  }
  0x71   : > { %5052 = vmatprep.subr.bf16.mxu1 %v6221_v3  ;;  %5036 = vmatprep.subr.bf16.mxu0 %v6221_v3  ;;  %v6243_v13 = vpack.c.bf16 %v435_v12, %v434_v11  ;;  %v666_v34 = vld [vmem:[#allocation2 + $0xc8] sm:$0xff]  ;;  %v667_v36 = vld [vmem:[#allocation2 + $0xd0] sm:$0xff]  ;;  %v668_v37 = vld [vmem:[#allocation2 + $0xd8] sm:$0xff]  ;;  %s5921_s13 = sshll.u32 %s5998_s21, 4  ;;  %s5922_s13 = int_to_ptr.vmem [resolvable:$false] %s5921_s13 }
  0x72   : > { %5054 = vmatpush3.bf16.msra.mxu1 %v6221_v3  ;;  %5038 = vmatpush3.bf16.msra.mxu0 %v6221_v3  ;;  %v5083_v35 = vpack.c.bf16 %v666_v34, %v665_v33  ;;  %v3407_v38 = vld [vmem:[%s7309_s1 + $0x48] sm:$0xff]  ;;  %v3408_v39 = vld [vmem:[%s7309_s1 + $0x50] sm:$0xff]  ;;  %v5087_v40 = vpack.c.bf16 %v668_v37, %v667_v36  ;;  %v669_v41 = vld [vmem:[#allocation2 + $0xe0] sm:$0xff]  ;;  %p5919_p8 = pnand %p5918_p12, %p7350_p7  ;;  %s5923_s22 = scalar_lea.vmem %s5922_s13, 32 }
  0x73   : > { %5056 = vmatprep.subr.bf16.mxu1 %v6223_v5  ;;  %5040 = vmatprep.subr.bf16.mxu0 %v6223_v5  ;;  %v670_v42 = vld [vmem:[#allocation2 + $0xe8] sm:$0xff]  ;;  %v3409_v43 = vld [vmem:[%s7309_s1 + $0x58] sm:$0x1]  ;;  %v3414_v44 = vld [vmem:[%s7309_s1 + $0x60] sm:$0xff]  ;;  %p5924_p13 = scmp.lt.s32.totalorder %s7268_s14, %s5922_s13  ;;  %p5925_p1 = scmp.lt.s32.totalorder %s5923_s22, %s5917_s23 }
  0x74   : > { %v5091_v45 = vpack.c.bf16 %v670_v42, %v669_v41  ;;  %v671_v46 = vld [vmem:[#allocation2 + $0xf0] sm:$0xff]  ;;  %v672_v47 = vld [vmem:[#allocation2 + $0xf8] sm:$0xff]  ;;  %v3415_v49 = vld [vmem:[%s7309_s1 + $0x68] sm:$0xff]  ;;  %s7266_s15 = scalar_lea.hbm %s7349_s12, %s3633_s25  ;;  %p5920_p11 = pneg %p5919_p8 }
  0x75   : > { %v5095_v48 = vpack.c.bf16 %v672_v47, %v671_v46  ;;  %v3416_v50 = vld [vmem:[%s7309_s1 + $0x70] sm:$0xff]  ;;  %v3417_v51 = vld [vmem:[%s7309_s1 + $0x78] sm:$0x1]  ;;  %v3422_v52 = vld [vmem:[%s7309_s1 + $0x80] sm:$0xff]  ;;  %p5926_p6 = por %p5925_p1, %p5924_p13 }
  0x76   : > { %5058 = vmatpush3.bf16.msra.mxu1 %v6223_v5  ;;  %5042 = vmatpush3.bf16.msra.mxu0 %v6223_v5  ;;  %v3423_v53 = vld [vmem:[%s7309_s1 + $0x88] sm:$0xff]  ;;  %v3424_v54 = vld [vmem:[%s7309_s1 + $0x90] sm:$0xff]  ;;  %v3425_v55 = vld [vmem:[%s7309_s1 + $0x98] sm:$0x1] }
  0x77   : > { %5060 = vmatprep.subr.bf16.mxu1 %v6236_v10  ;;  %5044 = vmatprep.subr.bf16.mxu0 %v6236_v10  ;;  %v538_v56 = vld [vmem:[#allocation2] sm:$0xff]  ;;  %v539_v57 = vld [vmem:[#allocation2 + $0x8] sm:$0xff]  ;;  %v540_v59 = vld [vmem:[#allocation2 + $0x10] sm:$0xff]  ;;  %p5927_p9 = pnand %p5926_p6, %p5920_p11 }
  0x78   : > { %v5099_v58 = vpack.c.bf16 %v539_v57, %v538_v56  ;;  %v541_v60 = vld [vmem:[#allocation2 + $0x18] sm:$0xff]  ;;  %v542_v1 = vld [vmem:[#allocation2 + $0x20] sm:$0xff]  ;;  %v543_v2 = vld [vmem:[#allocation2 + $0x28] sm:$0xff] }
  0x79   : > { %v5103_v63 = vpack.c.bf16 %v541_v60, %v540_v59  ;;  %v544_v8 = vld [vmem:[#allocation2 + $0x30] sm:$0xff]  ;;  %v545_v9 = vld [vmem:[#allocation2 + $0x38] sm:$0xff]  ;;  %v546_v12 = vld [vmem:[#allocation2 + $0x40] sm:$0xff] }
  0x7a   : > { %5062 = vmatpush3.bf16.msra.mxu1 %v6236_v10  ;;  %5046 = vmatpush3.bf16.msra.mxu0 %v6236_v10  ;;  %v5111_v11 = vpack.c.bf16 %v545_v9, %v544_v8  ;;  %v548_v15 = vld [vmem:[#allocation2 + $0x50] sm:$0xff]  ;;  %v550_v19 = vld [vmem:[#allocation2 + $0x60] sm:$0xff]  ;;  %v553_v25 = vld [vmem:[#allocation2 + $0x78] sm:$0xff] }
  0x7b   : > { %5064 = vmatprep.subr.bf16.mxu1 %v6243_v13  ;;  %5048 = vmatprep.subr.bf16.mxu0 %v6243_v13  ;;  %v948_v31 = vld [vmem:[#allocation2 + $0x110] sm:$0xff]  ;;  %v951_v36 = vld [vmem:[#allocation2 + $0x128] sm:$0xff]  ;;  %v953_v41 = vld [vmem:[#allocation2 + $0x138] sm:$0xff] }
  0x7c   : > { %v956_v47 = vld [vmem:[#allocation2 + $0x150] sm:$0xff]  ;;  %v961_v57 = vld [vmem:[#allocation2 + $0x178] sm:$0xff]  ;;  %v1154_v60 = vld [vmem:[#allocation2 + $0x180] sm:$0xff] }
  0x7d   : > { %v960_v56 = vld [vmem:[#allocation2 + $0x170] sm:$0xff]  ;;  %v1162_v8 = vld [vmem:[#allocation2 + $0x1c0] sm:$0xff]  ;;  %v1163_v9 = vld [vmem:[#allocation2 + $0x1c8] sm:$0xff] }
  0x7e   : > { %5066 = vmatpush3.bf16.msra.mxu1 %v6243_v13  ;;  %5050 = vmatpush3.bf16.msra.mxu0 %v6243_v13  ;;  %v5175_v59 = vpack.c.bf16 %v961_v57, %v960_v56  ;;  %vm6387_vm4 = vmpackc.low %vm1491_vm2, %vm5994_vm3 }
  0x7f   : > { %5132 = vmatprep.subr.bf16.mxu1 %v6221_v3  ;;  %5068 = vmatprep.subr.bf16.mxu0 %v5067_v16 }
  0x81   : > { %4146 = vmatmul.mubr.msk.f32.vlgmr.msra.gmra.mrb[0].mxu1 %vm440_vm0, %v3399_v17  ;;  %4124 = vmatmul.mubr.msk.f32.vlgmr.msra.gmra.mrb[0].mxu0 %vm440_vm0, %v437_v21 }
  0x82   : > { %4148 = vmatprep.mubr.msk.f32.mxu1 %vm440_vm0, %v3400_v20  ;;  %5134 = vmatpush3.bf16.msra.mxu1 %v6221_v3  ;;  %v551_v20 = vld [vmem:[#allocation2 + $0x68] sm:$0xff] }
  0x83   : > { %4126 = vmatprep.mubr.msk.f32.mxu0 %vm440_vm0, %v438_v22  ;;  %5136 = vmatprep.subr.bf16.mxu1 %v6223_v5  ;;  %v5123_v22 = vpack.c.bf16 %v551_v20, %v550_v19  ;;  %v1362_v20 = vld [vmem:[#allocation2 + $0x200] sm:$0xff] }
  0x84   : > { %5070 = vmatpush3.bf16.msra.mxu0 %v5067_v16  ;;  %v549_v16 = vld [vmem:[#allocation2 + $0x58] sm:$0xff] }
  0x85   : > { %4149 = vmatmul.mubr.msk.f32.gmra.mrb[2].mxu1 %vm440_vm0, %v3401_v24  ;;  %5072 = vmatprep.subr.bf16.mxu0 %v5071_v23  ;;  %v5119_v17 = vpack.c.bf16 %v549_v16, %v548_v15  ;;  %v552_v24 = vld [vmem:[#allocation2 + $0x70] sm:$0xff]  ;;  %v1167_v15 = vld [vmem:[#allocation2 + $0x1e8] sm:$0xff] }
  0x86   : > { %4127 = vmatmul.mubr.msk.f32.gmra.mrb[2].mxu0 %vm440_vm0, %v439_v27  ;;  %4243 = vmatprep.mubr.msk.f32.mxu1 %vm440_vm0, %v3406_v28  ;;  %v5127_v27 = vpack.c.bf16 %v553_v25, %v552_v24  ;;  %v946_v28 = vld [vmem:[#allocation2 + $0x100] sm:$0xff]  ;;  %v1365_v24 = vld [vmem:[#allocation2 + $0x218] sm:$0xff] }
  0x87   : > { %5138 = vmatpush3.bf16.msra.mxu1 %v6223_v5 }
  0x88   : > { %5140 = vmatprep.subr.bf16.mxu1 %v6236_v10  ;;  %5074 = vmatpush3.bf16.msra.mxu0 %v5071_v23 }
  0x89   : > { %5076 = vmatprep.subr.bf16.mxu0 %v5075_v29 }
  0x8b   : > { %5142 = vmatpush3.bf16.msra.mxu1 %v6236_v10 }
  0x8c   : > { %5144 = vmatprep.subr.bf16.mxu1 %v6243_v13  ;;  %5078 = vmatpush3.bf16.msra.mxu0 %v5075_v29  ;;  %v947_v29 = vld [vmem:[#allocation2 + $0x108] sm:$0xff] }
  0x8d   : > { %5080 = vmatprep.subr.bf16.mxu0 %v5079_v32  ;;  %v5147_v30 = vpack.c.bf16 %v947_v29, %v946_v28  ;;  %v1368_v29 = vld [vmem:[#allocation2 + $0x230] sm:$0xff] }
  0x8f   : > { %5146 = vmatpush3.bf16.msra.mxu1 %v6243_v13 }
  0x90   : > { %5180 = vmatprep.subr.bf16.mxu1 %v6221_v3  ;;  %5082 = vmatpush3.bf16.msra.mxu0 %v5079_v32  ;;  %v949_v32 = vld [vmem:[#allocation2 + $0x118] sm:$0xff] }
  0x91   : > { %5084 = vmatprep.subr.bf16.mxu0 %v5083_v35  ;;  %v5151_v33 = vpack.c.bf16 %v949_v32, %v948_v31  ;;  %v1370_v32 = vld [vmem:[#allocation2 + $0x240] sm:$0xff] }
  0x92   : > { %4244 = vmatmul.mubr.msk.f32.vlgmr.msra.gmra.mrb[4].mxu1 %vm440_vm0, %v3407_v38 }
  0x93   : > { %5182 = vmatpush3.bf16.msra.mxu1 %v6221_v3  ;;  %4246 = vmatprep.mubr.msk.f32.mxu1 %vm440_vm0, %v3408_v39 }
  0x94   : > { %5184 = vmatprep.subr.bf16.mxu1 %v6223_v5  ;;  %5086 = vmatpush3.bf16.msra.mxu0 %v5083_v35  ;;  %v950_v35 = vld [vmem:[#allocation2 + $0x120] sm:$0xff] }
  0x95   : > { %5088 = vmatprep.subr.bf16.mxu0 %v5087_v40  ;;  %v5155_v38 = vpack.c.bf16 %v951_v36, %v950_v35  ;;  %v1373_v36 = vld [vmem:[#allocation2 + $0x258] sm:$0xff] }
  0x96   : > { %4247 = vmatmul.mubr.msk.f32.gmra.mrb[6].mxu1 %vm440_vm0, %v3409_v43 }
  0x97   : > { %5186 = vmatpush3.bf16.msra.mxu1 %v6223_v5  ;;  %4303 = vmatprep.mubr.msk.f32.mxu1 %vm440_vm0, %v3414_v44  ;;  %v954_v44 = vld [vmem:[#allocation2 + $0x140] sm:$0xff] }
  0x98   : > { %5188 = vmatprep.subr.bf16.mxu1 %v6236_v10  ;;  %5090 = vmatpush3.bf16.msra.mxu0 %v5087_v40  ;;  %v952_v40 = vld [vmem:[#allocation2 + $0x130] sm:$0xff] }
  0x99   : > { %5092 = vmatprep.subr.bf16.mxu0 %v5091_v45  ;;  %v5159_v43 = vpack.c.bf16 %v953_v41, %v952_v40  ;;  %v1375_v40 = vld [vmem:[#allocation2 + $0x268] sm:$0xff]  ;;  %v1376_v41 = vld [vmem:[#allocation2 + $0x270] sm:$0xff] }
  0x9b   : > { %5190 = vmatpush3.bf16.msra.mxu1 %v6236_v10 }
  0x9c   : > { %5192 = vmatprep.subr.bf16.mxu1 %v6243_v13  ;;  %5094 = vmatpush3.bf16.msra.mxu0 %v5091_v45  ;;  %v955_v45 = vld [vmem:[#allocation2 + $0x148] sm:$0xff] }
  0x9d   : > { %5096 = vmatprep.subr.bf16.mxu0 %v5095_v48  ;;  %v5163_v46 = vpack.c.bf16 %v955_v45, %v954_v44  ;;  %v1482_v44 = vld [vmem:[#allocation5] sm:$0xff] }
  0x9e   : > { %v3430_v45 = vld [vmem:[%s7311_s3] ss:$0 sm:$0xff] }
  0x9f   : > { %5194 = vmatpush3.bf16.msra.mxu1 %v6243_v13 }
  0xa0   : > { %5228 = vmatprep.subr.bf16.mxu1 %v6221_v3  ;;  %5098 = vmatpush3.bf16.msra.mxu0 %v5095_v48  ;;  %v957_v48 = vld [vmem:[#allocation2 + $0x158] sm:$0xff] }
  0xa1   : > { %5100 = vmatprep.subr.bf16.mxu0 %v5099_v58 }
  0xa2   : > { %4304 = vmatmul.mubr.msk.f32.vlgmr.msra.gmra.mrb[8].mxu1 %vm440_vm0, %v3415_v49  ;;  %v5167_v49 = vpack.c.bf16 %v957_v48, %v956_v47 }
  0xa3   : > { %5230 = vmatpush3.bf16.msra.mxu1 %v6221_v3  ;;  %4306 = vmatprep.mubr.msk.f32.mxu1 %vm440_vm0, %v3416_v50 }
  0xa4   : > { %5232 = vmatprep.subr.bf16.mxu1 %v6223_v5 }
  0xa6   : > { %4307 = vmatmul.mubr.msk.f32.gmra.mrb[10].mxu1 %vm440_vm0, %v3417_v51  ;;  %v958_v51 = vld [vmem:[#allocation2 + $0x160] sm:$0xff] }
  0xa7   : > { %5234 = vmatpush3.bf16.msra.mxu1 %v6223_v5  ;;  %4363 = vmatprep.mubr.msk.f32.mxu1 %vm440_vm0, %v3422_v52  ;;  %v5107_v5 = vpack.c.bf16 %v543_v2, %v542_v1  ;;  %v959_v52 = vld [vmem:[#allocation2 + $0x168] sm:$0xff]  ;;  %v1158_v2 = vld [vmem:[#allocation2 + $0x1a0] sm:$0xff] }
  0xa8   : > { %5236 = vmatprep.subr.bf16.mxu1 %v6236_v10 }
  0xab   : > { %5238 = vmatpush3.bf16.msra.mxu1 %v6236_v10 }
  0xac   : > { %5240 = vmatprep.subr.bf16.mxu1 %v6243_v13 }
  0xaf   : > { %5242 = vmatpush3.bf16.msra.mxu1 %v6243_v13  ;;  %v547_v13 = vld [vmem:[#allocation2 + $0x48] sm:$0xff] }
  0xb0   : > { %v5115_v14 = vpack.c.bf16 %v547_v13, %v546_v12  ;;  %v1165_v12 = vld [vmem:[#allocation2 + $0x1d8] sm:$0xff] }
  0xb2   : > { %4364 = vmatmul.mubr.msk.f32.vlgmr.msra.gmra.mrb[12].mxu1 %vm440_vm0, %v3423_v53 }
  0xb3   : > { %4366 = vmatprep.mubr.msk.f32.mxu1 %vm440_vm0, %v3424_v54  ;;  %v5171_v54 = vpack.c.bf16 %v959_v52, %v958_v51 }
  0xb6   : > { %4367 = vmatmul.mubr.msk.f32.gmra.mrb[14].mxu1 %vm440_vm0, %v3425_v55 }
  0xb7   : > { %4415 = vmatprep.mubr.msk.f32.mxu1 %vm1484_vm1, %v1482_v44  ;;  %v1581_v44 = vld [vmem:[#allocation7 + $0x58] sm:$0xff] }
 0x154   : > { %v4147_v61 = vpop.f32.mrb[0].mxu1  ;;  %v4125_v0 = vpop.f32.mrb[0].mxu0 }
 0x155   : > { %v637_v62 = vpop.f32.mrb[1].mxu1  ;;  %v519_v3 = vpop.f32.mrb[1].mxu0 }
 0x156   : > { %4183 = vmatprep.mubr.f32.mxu0 %v637_v62 }
 0x157   : > { %4184 = vmatmul.mubr.f32.vlgmr.msra.gmra.mrb[4].mxu0 %v4147_v61  ;;  %v1155_v61 = vld [vmem:[#allocation2 + $0x188] sm:$0xff] }
 0x158   : > { %5102 = vmatpush3.bf16.msra.mxu0 %v5099_v58  ;;  %v4150_v4 = vpop.f32.mrb[2].mxu1  ;;  %v5195_v62 = vpack.c.bf16 %v1155_v61, %v1154_v60  ;;  %v1483_v61 = vld [vmem:[#allocation5 + $0x8] sm:$0x1f] }
 0x159   : > { %5104 = vmatprep.subr.bf16.mxu0 %v5103_v63  ;;  %v647_v6 = vpop.f32.mrb[3].mxu1  ;;  %v4128_v7 = vpop.f32.mrb[2].mxu0 }
 0x15a   : > { %4186 = vmatprep.mubr.f32.mxu0 %v647_v6  ;;  %v529_v10 = vpop.f32.mrb[3].mxu0  ;;  %v1161_v6 = vld [vmem:[#allocation2 + $0x1b8] sm:$0xff] }
 0x15b   : > { %4187 = vmatmul.mubr.f32.gmra.mrb[6].mxu0 %v4150_v4 }
 0x15c   : > { %5106 = vmatpush3.bf16.msra.mxu0 %v5103_v63  ;;  %4221 = vmatprep.mubr.f32.mxu0 %v519_v3  ;;  %v1156_v63 = vld [vmem:[#allocation2 + $0x190] sm:$0xff]  ;;  %v1159_v3 = vld [vmem:[#allocation2 + $0x1a8] sm:$0xff] }
 0x15d   : > { %5108 = vmatprep.subr.bf16.mxu0 %v5107_v5  ;;  %v5203_v4 = vpack.c.bf16 %v1159_v3, %v1158_v2  ;;  %v1673_v2 = vld [vmem:[#allocation7 + $0x90] sm:$0xff]  ;;  %v1674_v3 = vld [vmem:[#allocation7 + $0x98] sm:$0xff] }
 0x160   : > { %5110 = vmatpush3.bf16.msra.mxu0 %v5107_v5  ;;  %v1160_v5 = vld [vmem:[#allocation2 + $0x1b0] sm:$0xff] }
 0x161   : > { %5112 = vmatprep.subr.bf16.mxu0 %v5111_v11 }
 0x164   : > { %5114 = vmatpush3.bf16.msra.mxu0 %v5111_v11  ;;  %v1164_v11 = vld [vmem:[#allocation2 + $0x1d0] sm:$0xff] }
 0x165   : > { %5116 = vmatprep.subr.bf16.mxu0 %v5115_v14  ;;  %v6349_v18 = vpop.f32.mrb[4].mxu1  ;;  %v5215_v13 = vpack.c.bf16 %v1165_v12, %v1164_v11  ;;  %v1679_v12 = vld [vmem:[#allocation7 + $0xc0] sm:$0xff] }
 0x166   : > { %v926_v21 = vpop.f32.mrb[5].mxu1 }
 0x168   : > { %5118 = vmatpush3.bf16.msra.mxu0 %v5115_v14  ;;  %v1166_v14 = vld [vmem:[#allocation2 + $0x1e0] sm:$0xff] }
 0x169   : > { %5120 = vmatprep.subr.bf16.mxu0 %v5119_v17  ;;  %v6351_v23 = vpop.f32.mrb[6].mxu1  ;;  %v5219_v16 = vpack.c.bf16 %v1167_v15, %v1166_v14  ;;  %v1681_v15 = vld [vmem:[#allocation7 + $0xd0] sm:$0xff] }
 0x16a   : > { %v6353_v26 = vpop.f32.mrb[7].mxu1 }
 0x16c   : > { %5122 = vmatpush3.bf16.msra.mxu0 %v5119_v17  ;;  %v1168_v17 = vld [vmem:[#allocation2 + $0x1f0] sm:$0xff] }
 0x16d   : > { %5124 = vmatprep.subr.bf16.mxu0 %v5123_v22 }
 0x170   : > { %5126 = vmatpush3.bf16.msra.mxu0 %v5123_v22 }
 0x171   : > { %5128 = vmatprep.subr.bf16.mxu0 %v5127_v27 }
 0x174   : > { %5130 = vmatpush3.bf16.msra.mxu0 %v5127_v27  ;;  %v1367_v27 = vld [vmem:[#allocation2 + $0x228] sm:$0xff] }
 0x175   : > { %5148 = vmatprep.subr.bf16.mxu0 %v5147_v30  ;;  %v6355_v34 = vpop.f32.mrb[8].mxu1 }
 0x176   : > { %v1134_v37 = vpop.f32.mrb[9].mxu1 }
 0x177   : > { %4222 = vmatmul.mubr.f32.vlgmr.msra.gmra.mrb[4].mxu0 %v4125_v0  ;;  %v1157_v0 = vld [vmem:[#allocation2 + $0x198] sm:$0xff] }
 0x178   : > { %5150 = vmatpush3.bf16.msra.mxu0 %v5147_v30  ;;  %4224 = vmatprep.mubr.f32.mxu0 %v529_v10  ;;  %v5199_v1 = vpack.c.bf16 %v1157_v0, %v1156_v63  ;;  %v5211_v10 = vpack.c.bf16 %v1163_v9, %v1162_v8  ;;  %v1369_v30 = vld [vmem:[#allocation2 + $0x238] sm:$0xff]  ;;  %v1671_v63 = vld [vmem:[#allocation7 + $0x80] sm:$0xff]  ;;  %v1677_v9 = vld [vmem:[#allocation7 + $0xb0] sm:$0xff] }
 0x179   : > { %5152 = vmatprep.subr.bf16.mxu0 %v5151_v33  ;;  %v6357_v39 = vpop.f32.mrb[10].mxu1  ;;  %v5255_v31 = vpack.c.bf16 %v1369_v30, %v1368_v29  ;;  %v1672_v0 = vld [vmem:[#allocation7 + $0x88] sm:$0xff]  ;;  %v1572_v29 = vld [vmem:[#allocation7 + $0x10] sm:$0xff]  ;;  %v1573_v30 = vld [vmem:[#allocation7 + $0x18] sm:$0xff] }
 0x17a   : > { %v6359_v42 = vpop.f32.mrb[11].mxu1 }
 0x17b   : > { %4225 = vmatmul.mubr.f32.gmra.mrb[6].mxu0 %v4128_v7  ;;  %v5207_v7 = vpack.c.bf16 %v1161_v6, %v1160_v5  ;;  %v5299_v5 = vpack.c.bf16 %v1674_v3, %v1673_v2  ;;  %v1675_v6 = vld [vmem:[#allocation7 + $0xa0] sm:$0xff]  ;;  %v1929_v2 = vld [vmem:[#allocation7 + $0x138] sm:$0xff] }
 0x17c   : > { %5154 = vmatpush3.bf16.msra.mxu0 %v5151_v33  ;;  %4281 = vmatprep.mubr.f32.mxu0 %v926_v21  ;;  %v1363_v21 = vld [vmem:[#allocation2 + $0x208] sm:$0xff] }
 0x17d   : > { %5156 = vmatprep.subr.bf16.mxu0 %v5155_v38  ;;  %v5243_v22 = vpack.c.bf16 %v1363_v21, %v1362_v20  ;;  %v1371_v33 = vld [vmem:[#allocation2 + $0x248] sm:$0xff]  ;;  %v1685_v21 = vld [vmem:[#allocation7 + $0xf0] sm:$0xff] }
 0x17e   : > { %v5259_v35 = vpack.c.bf16 %v1371_v33, %v1370_v32  ;;  %v5331_v33 = vpack.c.bf16 %v1573_v30, %v1572_v29  ;;  %v3451_v30 = vld [vmem:[%s7315_s7 + $0xd0] sm:$0xff] }
 0x180   : > { %5158 = vmatpush3.bf16.msra.mxu0 %v5155_v38  ;;  %v1374_v38 = vld [vmem:[#allocation2 + $0x260] sm:$0xff] }
 0x181   : > { %5160 = vmatprep.subr.bf16.mxu0 %v5159_v43 }
 0x184   : > { %5162 = vmatpush3.bf16.msra.mxu0 %v5159_v43 }
 0x185   : > { %5164 = vmatprep.subr.bf16.mxu0 %v5163_v46  ;;  %v6361_v50 = vpop.f32.mrb[12].mxu1 }
 0x186   : > { %v6363_v53 = vpop.f32.mrb[13].mxu1 }
 0x188   : > { %5166 = vmatpush3.bf16.msra.mxu0 %v5163_v46 }
 0x189   : > { %5168 = vmatprep.subr.bf16.mxu0 %v5167_v49  ;;  %v6365_v55 = vpop.f32.mrb[14].mxu1 }
 0x18a   : > { %v6367_v58 = vpop.f32.mrb[15].mxu1 }
 0x18c   : > { %5170 = vmatpush3.bf16.msra.mxu0 %v5167_v49 }
 0x18d   : > { %5172 = vmatprep.subr.bf16.mxu0 %v5171_v54 }
 0x190   : > { %5174 = vmatpush3.bf16.msra.mxu0 %v5171_v54 }
 0x191   : > { %5176 = vmatprep.subr.bf16.mxu0 %v5175_v59 }
 0x194   : > { %5178 = vmatpush3.bf16.msra.mxu0 %v5175_v59 }
 0x195   : > { %5196 = vmatprep.subr.bf16.mxu0 %v5195_v62 }
 0x197   : > { %4282 = vmatmul.mubr.f32.vlgmr.msra.gmra.mrb[4].mxu0 %v6349_v18  ;;  %v1169_v18 = vld [vmem:[#allocation2 + $0x1f8] sm:$0xff] }
 0x198   : > { %5198 = vmatpush3.bf16.msra.mxu0 %v5195_v62  ;;  %4284 = vmatprep.mubr.f32.mxu0 %v6353_v26  ;;  %v5223_v19 = vpack.c.bf16 %v1169_v18, %v1168_v17  ;;  %v1366_v26 = vld [vmem:[#allocation2 + $0x220] sm:$0xff]  ;;  %v1587_v62 = vld [vmem:[#allocation5 + $0x10] sm:$0xff] }
 0x199   : > { %5200 = vmatprep.subr.bf16.mxu0 %v5199_v1  ;;  %v5251_v28 = vpack.c.bf16 %v1367_v27, %v1366_v26  ;;  %v1683_v18 = vld [vmem:[#allocation7 + $0xe0] sm:$0xff] }
 0x19b   : > { %4285 = vmatmul.mubr.f32.gmra.mrb[6].mxu0 %v6351_v23  ;;  %v1364_v23 = vld [vmem:[#allocation2 + $0x210] sm:$0xff] }
 0x19c   : > { %5202 = vmatpush3.bf16.msra.mxu0 %v5199_v1  ;;  %4341 = vmatprep.mubr.f32.mxu0 %v1134_v37  ;;  %v5247_v25 = vpack.c.bf16 %v1365_v24, %v1364_v23  ;;  %v5295_v1 = vpack.c.bf16 %v1672_v0, %v1671_v63  ;;  %v1570_v24 = vld [vmem:[#allocation7] sm:$0xff]  ;;  %v1927_v0 = vld [vmem:[#allocation7 + $0x128] sm:$0xff] }
 0x19d   : > { %5204 = vmatprep.subr.bf16.mxu0 %v5203_v4  ;;  %v1926_v63 = vld [vmem:[#allocation7 + $0x120] sm:$0xff] }
 0x1a0   : > { %5206 = vmatpush3.bf16.msra.mxu0 %v5203_v4  ;;  %v1588_v4 = vld [vmem:[#allocation5 + $0x18] sm:$0x1f] }
 0x1a1   : > { %5208 = vmatprep.subr.bf16.mxu0 %v5207_v7 }
 0x1a4   : > { %5210 = vmatpush3.bf16.msra.mxu0 %v5207_v7  ;;  %v1676_v7 = vld [vmem:[#allocation7 + $0xa8] sm:$0xff] }
 0x1a5   : > { %5212 = vmatprep.subr.bf16.mxu0 %v5211_v10  ;;  %v5303_v8 = vpack.c.bf16 %v1676_v7, %v1675_v6  ;;  %v1933_v6 = vld [vmem:[#allocation7 + $0x158] sm:$0xff] }
 0x1a8   : > { %5214 = vmatpush3.bf16.msra.mxu0 %v5211_v10  ;;  %v1678_v10 = vld [vmem:[#allocation7 + $0xb8] sm:$0xff] }
 0x1a9   : > { %5216 = vmatprep.subr.bf16.mxu0 %v5215_v13  ;;  %v5307_v11 = vpack.c.bf16 %v1678_v10, %v1677_v9  ;;  %v1935_v9 = vld [vmem:[#allocation7 + $0x168] sm:$0xff] }
 0x1ac   : > { %5218 = vmatpush3.bf16.msra.mxu0 %v5215_v13  ;;  %v1680_v13 = vld [vmem:[#allocation7 + $0xc8] sm:$0xff] }
 0x1ad   : > { %5220 = vmatprep.subr.bf16.mxu0 %v5219_v16  ;;  %v5311_v14 = vpack.c.bf16 %v1680_v13, %v1679_v12  ;;  %v1937_v12 = vld [vmem:[#allocation7 + $0x178] sm:$0xff] }
 0x1b0   : > { %5222 = vmatpush3.bf16.msra.mxu0 %v5219_v16  ;;  %v1682_v16 = vld [vmem:[#allocation7 + $0xd8] sm:$0xff] }
 0x1b1   : > { %5224 = vmatprep.subr.bf16.mxu0 %v5223_v19  ;;  %v5315_v17 = vpack.c.bf16 %v1682_v16, %v1681_v15  ;;  %v3441_v15 = vld [vmem:[%s7315_s7 + $0x80] sm:$0xff]  ;;  %v3442_v16 = vld [vmem:[%s7315_s7 + $0x88] sm:$0xff] }
 0x1b4   : > { %5226 = vmatpush3.bf16.msra.mxu0 %v5223_v19  ;;  %v1684_v19 = vld [vmem:[#allocation7 + $0xe8] sm:$0xff] }
 0x1b5   : > { %5244 = vmatprep.subr.bf16.mxu0 %v5243_v22  ;;  %v5319_v20 = vpack.c.bf16 %v1684_v19, %v1683_v18  ;;  %v3443_v18 = vld [vmem:[%s7315_s7 + $0x90] sm:$0xff]  ;;  %v3444_v19 = vld [vmem:[%s7315_s7 + $0x98] sm:$0xff] }
 0x1b7   : > { %4342 = vmatmul.mubr.f32.vlgmr.msra.gmra.mrb[4].mxu0 %v6355_v34  ;;  %v1372_v34 = vld [vmem:[#allocation2 + $0x250] sm:$0xff] }
 0x1b8   : > { %5246 = vmatpush3.bf16.msra.mxu0 %v5243_v22  ;;  %4344 = vmatprep.mubr.f32.mxu0 %v6359_v42  ;;  %v5263_v37 = vpack.c.bf16 %v1373_v36, %v1372_v34  ;;  %v1377_v42 = vld [vmem:[#allocation2 + $0x278] sm:$0xff]  ;;  %v1686_v22 = vld [vmem:[#allocation7 + $0xf8] sm:$0xff] }
 0x1b9   : > { %5248 = vmatprep.subr.bf16.mxu0 %v5247_v25  ;;  %v5271_v43 = vpack.c.bf16 %v1377_v42, %v1376_v41  ;;  %v5323_v23 = vpack.c.bf16 %v1686_v22, %v1685_v21  ;;  %v1575_v34 = vld [vmem:[#allocation7 + $0x28] sm:$0xff]  ;;  %v3445_v21 = vld [vmem:[%s7315_s7 + $0xa0] sm:$0xff]  ;;  %v3446_v22 = vld [vmem:[%s7315_s7 + $0xa8] sm:$0xff] }
 0x1ba   : > { %v1579_v41 = vld [vmem:[#allocation7 + $0x48] sm:$0xff] }
 0x1bb   : > { %4345 = vmatmul.mubr.f32.gmra.mrb[6].mxu0 %v6357_v39  ;;  %v5267_v39 = vpack.c.bf16 %v1375_v40, %v1374_v38  ;;  %v1577_v38 = vld [vmem:[#allocation7 + $0x38] sm:$0xff] }
 0x1bc   : > { %5250 = vmatpush3.bf16.msra.mxu0 %v5247_v25  ;;  %4401 = vmatprep.mubr.f32.mxu0 %v6363_v53  ;;  %v1571_v25 = vld [vmem:[#allocation7 + $0x8] sm:$0xff] }
 0x1bd   : > { %5252 = vmatprep.subr.bf16.mxu0 %v5251_v28  ;;  %v5327_v26 = vpack.c.bf16 %v1571_v25, %v1570_v24  ;;  %v3447_v24 = vld [vmem:[%s7315_s7 + $0xb0] sm:$0xff]  ;;  %v3448_v25 = vld [vmem:[%s7315_s7 + $0xb8] sm:$0xff] }
 0x1c0   : > { %5254 = vmatpush3.bf16.msra.mxu0 %v5251_v28 }
 0x1c1   : > { %5256 = vmatprep.subr.bf16.mxu0 %v5255_v31 }
 0x1c4   : > { %5258 = vmatpush3.bf16.msra.mxu0 %v5255_v31 }
 0x1c5   : > { %5260 = vmatprep.subr.bf16.mxu0 %v5259_v35 }
 0x1c8   : > { %5262 = vmatpush3.bf16.msra.mxu0 %v5259_v35  ;;  %v1574_v35 = vld [vmem:[#allocation7 + $0x20] sm:$0xff] }
 0x1c9   : > { %5264 = vmatprep.subr.bf16.mxu0 %v5263_v37  ;;  %v5335_v36 = vpack.c.bf16 %v1575_v34, %v1574_v35  ;;  %v2027_v35 = vld [vmem:[%s7315_s7 + $0x8] sm:$0xff] }
 0x1cc   : > { %5266 = vmatpush3.bf16.msra.mxu0 %v5263_v37  ;;  %v1576_v37 = vld [vmem:[#allocation7 + $0x30] sm:$0xff] }
 0x1cd   : > { %5268 = vmatprep.subr.bf16.mxu0 %v5267_v39  ;;  %v5339_v40 = vpack.c.bf16 %v1577_v38, %v1576_v37  ;;  %v2028_v38 = vld [vmem:[%s7315_s7 + $0x10] sm:$0xff] }
 0x1d0   : > { %5270 = vmatpush3.bf16.msra.mxu0 %v5267_v39  ;;  %v1578_v39 = vld [vmem:[#allocation7 + $0x40] sm:$0xff] }
 0x1d1   : > { %5272 = vmatprep.subr.bf16.mxu0 %v5271_v43  ;;  %v5343_v42 = vpack.c.bf16 %v1579_v41, %v1578_v39  ;;  %v2030_v41 = vld [vmem:[%s7315_s7 + $0x20] sm:$0xff] }
 0x1d4   : > { %5274 = vmatpush3.bf16.msra.mxu0 %v5271_v43  ;;  %v1580_v43 = vld [vmem:[#allocation7 + $0x50] sm:$0xff] }
 0x1d7   : > { %4402 = vmatmul.mubr.f32.vlgmr.msra.gmra.mrb[4].mxu0 %v6361_v50 }
 0x1d8   : > { %4404 = vmatprep.mubr.f32.mxu0 %v6367_v58 }
 0x1db   : > { %4405 = vmatmul.mubr.f32.gmra.mrb[6].mxu0 %v6365_v55 }
 0x2aa   : > { %v4403_v46 = vpop.f32.mrb[4].mxu0 }
 0x2ab   : > { %v1475_v47 = vadd.f32 %v4403_v46, %v3430_v45  ;;  %v1444_v48 = vpop.f32.mrb[5].mxu0  ;;  %v1582_v46 = vld [vmem:[#allocation7 + $0x60] sm:$0xff] }
 0x2ac   : > { %v1474_v49 = vadd.f32 %v3430_v45, %v1444_v48 }
 0x2ad   : > { %v1479_v51 = vmax.f32 %v1475_v47, 0.0  ;;  %v1583_v47 = vld [vmem:[#allocation7 + $0x68] sm:$0xff] }
 0x2ae   : > { %v1478_v52 = vmax.f32 %v1474_v49, 0.0  ;;  %v4406_v53 = vpop.f32.mrb[6].mxu0  ;;  %v5351_v48 = vpack.c.bf16 %v1583_v47, %v1582_v46  ;;  %v1584_v49 = vld [vmem:[#allocation7 + $0x70] sm:$0xff] }
 0x2af   : > { %v1477_v50 = vadd.f32 %v4406_v53, %v3430_v45  ;;  %v1454_v54 = vpop.f32.mrb[7].mxu0  ;;  %v1838_v53 = vld [vmem:[#allocation5 + $0x20] sm:$0xff] }
 0x2b0   : > { %v6383_v56 = vpack.c.bf16 %v1479_v51, %v1478_v52  ;;  %v1476_v55 = vadd.f32 %v3430_v45, %v1454_v54  ;;  %v5347_v45 = vpack.c.bf16 %v1581_v44, %v1580_v43  ;;  %v1585_v51 = vld [vmem:[#allocation7 + $0x78] sm:$0xff]  ;;  %v1923_v54 = vld [vmem:[#allocation7 + $0x108] sm:$0xff]  ;;  %v2032_v44 = vld [vmem:[%s7315_s7 + $0x30] sm:$0xff] }
 0x2b1   : > { %v1481_v57 = vmax.f32 %v1477_v50, 0.0  ;;  %v5355_v52 = vpack.c.bf16 %v1585_v51, %v1584_v49  ;;  %v1922_v50 = vld [vmem:[#allocation7 + $0x100] sm:$0xff]  ;;  %v2034_v47 = vld [vmem:[%s7315_s7 + $0x40] sm:$0xff] }
 0x2b2   : > { %v1480_v58 = vmax.f32 %v1476_v55, 0.0  ;;  %5276 = vmatprep.subr.bf16.mxu1 %v6383_v56  ;;  %v5369_v55 = vpack.c.bf16 %v1923_v54, %v1922_v50  ;;  %v2036_v51 = vld [vmem:[%s7315_s7 + $0x50] sm:$0xff]  ;;  %v2038_v50 = vld [vmem:[%s7315_s7 + $0x60] sm:$0xff]  ;;  %v2039_v54 = vld [vmem:[%s7315_s7 + $0x68] sm:$0xff] }
 0x2b3   : > { %5278 = vmatpush3.bf16.msra.mxu1 %v6383_v56 }
 0x2b4   : > { %v6391_v60 = vpack.c.bf16 %v1481_v57, %v1480_v58  ;;  %v1924_v57 = vld [vmem:[#allocation7 + $0x110] sm:$0xff]  ;;  %v1925_v58 = vld [vmem:[#allocation7 + $0x118] sm:$0xff] }
 0x2b6   : > { %5281 = vmatprep.subr.msk.bf16.mxu1 %vm6387_vm4, %v6391_v60 }
 0x2b7   : > { %5284 = vmatpush3.bf16.msk.msra.mxu1 %vm6387_vm4, %v6391_v60 }
 0x2b8   : > { %5286 = vmatprep.subr.bf16.mxu1 %v6383_v56 }
 0x2ba   : > { %4416 = vmatmul.mubr.msk.f32.vlgmr.msra.gmra.mrb[16].mxu1 %vm1484_vm1, %v1483_v61  ;;  %v1839_v61 = vld [vmem:[#allocation5 + $0x28] sm:$0x1f] }
 0x2bb   : > { %5288 = vmatpush3.bf16.msra.mxu1 %v6383_v56  ;;  %4426 = vmatprep.mubr.msk.f32.mxu1 %vm1484_vm1, %v1587_v62  ;;  %v5373_v62 = vpack.c.bf16 %v1925_v58, %v1924_v57  ;;  %v3453_v57 = vld [vmem:[%s7315_s7 + $0xe0] sm:$0xff]  ;;  %v3454_v58 = vld [vmem:[%s7315_s7 + $0xe8] sm:$0xff] }
 0x2bc   : > { %5291 = vmatprep.subr.msk.bf16.mxu1 %vm6387_vm4, %v6391_v60 }
 0x2bf   : > { %5294 = vmatpush3.bf16.msk.msra.mxu1 %vm6387_vm4, %v6391_v60 }
 0x2c0   : > { %5296 = vmatprep.subr.bf16.mxu1 %v5295_v1 }
 0x2c2   : > { %4427 = vmatmul.mubr.msk.f32.vlgmr.msra.gmra.mrb[18].mxu1 %vm1484_vm1, %v1588_v4  ;;  %v1930_v4 = vld [vmem:[#allocation7 + $0x140] sm:$0xff] }
 0x2c3   : > { %5298 = vmatpush3.bf16.msra.mxu1 %v5295_v1  ;;  %v1928_v1 = vld [vmem:[#allocation7 + $0x130] sm:$0xff] }
 0x2c4   : > { %5300 = vmatprep.subr.bf16.mxu1 %v5299_v5  ;;  %v5381_v3 = vpack.c.bf16 %v1929_v2, %v1928_v1  ;;  %v3456_v1 = vld [vmem:[%s7315_s7 + $0xf8] sm:$0xff] }
 0x2c7   : > { %5302 = vmatpush3.bf16.msra.mxu1 %v5299_v5  ;;  %v1931_v5 = vld [vmem:[#allocation7 + $0x148] sm:$0xff] }
 0x2c8   : > { %5304 = vmatprep.subr.bf16.mxu1 %v5303_v8  ;;  %v5385_v59 = vpack.c.bf16 %v1931_v5, %v1930_v4  ;;  %v3440_v4 = vld [vmem:[%s7314_s6] ss:$0 sm:$0xff] }
 0x2cb   : > { %5306 = vmatpush3.bf16.msra.mxu1 %v5303_v8  ;;  %v1934_v8 = vld [vmem:[#allocation7 + $0x160] sm:$0xff] }
 0x2cc   : > { %5308 = vmatprep.subr.bf16.mxu1 %v5307_v11  ;;  %v5393_v10 = vpack.c.bf16 %v1935_v9, %v1934_v8  ;;  %v3457_v9 = vld [vmem:[%s7315_s7 + $0x100] sm:$0xff] }
 0x2cf   : > { %5310 = vmatpush3.bf16.msra.mxu1 %v5307_v11  ;;  %v1936_v11 = vld [vmem:[#allocation7 + $0x170] sm:$0xff] }
 0x2d0   : > { %5312 = vmatprep.subr.bf16.mxu1 %v5311_v14  ;;  %v5397_v13 = vpack.c.bf16 %v1937_v12, %v1936_v11 }
 0x2d3   : > { %5314 = vmatpush3.bf16.msra.mxu1 %v5311_v14  ;;  %v5995_v14 = vmov 0.0|0.0  }
 0x2d4   : > { %5316 = vmatprep.subr.bf16.mxu1 %v5315_v17  ;;  %5401 = vmatprep.subr.bf16.mxu0 %v5995_v14 }
 0x2d7   : > { %5318 = vmatpush3.bf16.msra.mxu1 %v5315_v17  ;;  %v5402_v17 = vpack.c.bf16 %v3442_v16, %v3441_v15  ;;  %v3476_v15 = vld [vmem:[%s7315_s7 + $0x198] sm:$0xff] }
 0x2d8   : > { %5320 = vmatprep.subr.bf16.mxu1 %v5319_v20 }
 0x2d9   : > { %5403 = vmatpush3.bf16.msra.mxu0 %v5402_v17 }
 0x2da   : > { %5404 = vmatprep.subr.bf16.mxu0 %v5995_v14 }
 0x2db   : > { %5322 = vmatpush3.bf16.msra.mxu1 %v5319_v20  ;;  %v5405_v20 = vpack.c.bf16 %v3444_v19, %v3443_v18  ;;  %v3459_v18 = vld [vmem:[%s7315_s7 + $0x110] sm:$0xff]  ;;  %v3460_v19 = vld [vmem:[%s7315_s7 + $0x118] sm:$0xff] }
 0x2dc   : > { %5324 = vmatprep.subr.bf16.mxu1 %v5323_v23 }
 0x2dd   : > { %5406 = vmatpush3.bf16.msra.mxu0 %v5405_v20 }
 0x2de   : > { %5407 = vmatprep.subr.bf16.mxu0 %v5995_v14 }
 0x2df   : > { %5326 = vmatpush3.bf16.msra.mxu1 %v5323_v23  ;;  %v5408_v23 = vpack.c.bf16 %v3446_v22, %v3445_v21  ;;  %v3477_v21 = vld [vmem:[%s7315_s7 + $0x1a0] sm:$0xff]  ;;  %v3478_v22 = vld [vmem:[%s7315_s7 + $0x1a8] sm:$0xff] }
 0x2e0   : > { %5328 = vmatprep.subr.bf16.mxu1 %v5327_v26 }
 0x2e1   : > { %5409 = vmatpush3.bf16.msra.mxu0 %v5408_v23  ;;  %v5453_v23 = vpack.c.bf16 %v3460_v19, %v3459_v18  ;;  %v3512_v18 = vld [vmem:[%s7315_s7 + $0x2b8] sm:$0xff] }
 0x2e2   : > { %5410 = vmatprep.subr.bf16.mxu0 %v5995_v14 }
 0x38d   : > { %v4417_v27 = vpop.f32.mrb[16].mxu1 }
 0x38e   : > { %v1561_v28 = vpop.f32.mrb[17].mxu1 }
 0x395   : > { %v4428_v31 = vpop.f32.mrb[18].mxu1 }
 0x396   : > { %v1661_v32 = vpop.f32.mrb[19].mxu1 }
 0x397   : > { %4461 = vmatprep.mubr.f32.mxu1 %v1661_v32 }
 0x398   : > { %4462 = vmatmul.mubr.f32.vlgmr.msra.gmra.mrb[20].mxu1 %v4428_v31  ;;  %v3452_v31 = vld [vmem:[%s7315_s7 + $0xd8] sm:$0xff] }
 0x399   : > { %5330 = vmatpush3.bf16.msra.mxu1 %v5327_v26  ;;  %4496 = vmatprep.mubr.f32.mxu1 %v1561_v28  ;;  %v5411_v26 = vpack.c.bf16 %v3448_v25, %v3447_v24  ;;  %v3450_v28 = vld [vmem:[%s7315_s7 + $0xc8] sm:$0xff]  ;;  %v5417_v32 = vpack.c.bf16 %v3452_v31, %v3451_v30  ;;  %v3461_v24 = vld [vmem:[%s7315_s7 + $0x120] sm:$0xff]  ;;  %v3463_v30 = vld [vmem:[%s7315_s7 + $0x130] sm:$0xff] }
 0x39a   : > { %5332 = vmatprep.subr.bf16.mxu1 %v5331_v33  ;;  %v3462_v25 = vld [vmem:[%s7315_s7 + $0x128] sm:$0xff]  ;;  %v3464_v31 = vld [vmem:[%s7315_s7 + $0x138] sm:$0xff] }
 0x39b   : > { %5412 = vmatpush3.bf16.msra.mxu0 %v5411_v26  ;;  %v5480_v26 = vpack.c.bf16 %v3478_v22, %v3477_v21  ;;  %v3496_v21 = vld [vmem:[%s7315_s7 + $0x238] sm:$0xff] }
 0x39c   : > { %5413 = vmatprep.subr.bf16.mxu0 %v5995_v14 }
 0x39d   : > { %5334 = vmatpush3.bf16.msra.mxu1 %v5331_v33  ;;  %v2026_v33 = vld [vmem:[%s7315_s7] sm:$0xff] }
 0x39e   : > { %5336 = vmatprep.subr.bf16.mxu1 %v5335_v36 }
 0x3a1   : > { %5338 = vmatpush3.bf16.msra.mxu1 %v5335_v36  ;;  %v5426_v36 = vpack.c.bf16 %v2027_v35, %v2026_v33  ;;  %v3481_v33 = vld [vmem:[%s7315_s7 + $0x1c0] sm:$0xff]  ;;  %v3482_v35 = vld [vmem:[%s7315_s7 + $0x1c8] sm:$0xff] }
 0x3a2   : > { %5340 = vmatprep.subr.bf16.mxu1 %v5339_v40 }
 0x3a5   : > { %5342 = vmatpush3.bf16.msra.mxu1 %v5339_v40  ;;  %v2029_v40 = vld [vmem:[%s7315_s7 + $0x18] sm:$0xff] }
 0x3a6   : > { %5344 = vmatprep.subr.bf16.mxu1 %v5343_v42  ;;  %v5429_v39 = vpack.c.bf16 %v2029_v40, %v2028_v38  ;;  %v5486_v38 = vpack.c.bf16 %v3482_v35, %v3481_v33  ;;  %v3483_v40 = vld [vmem:[%s7315_s7 + $0x1d0] sm:$0xff]  ;;  %v3500_v33 = vld [vmem:[%s7315_s7 + $0x258] sm:$0xff] }
 0x3a9   : > { %5346 = vmatpush3.bf16.msra.mxu1 %v5343_v42  ;;  %v2031_v42 = vld [vmem:[%s7315_s7 + $0x28] sm:$0xff] }
 0x3aa   : > { %5348 = vmatprep.subr.bf16.mxu1 %v5347_v45  ;;  %v5432_v43 = vpack.c.bf16 %v2031_v42, %v2030_v41  ;;  %v3467_v42 = vld [vmem:[%s7315_s7 + $0x150] sm:$0xff] }
 0x3ad   : > { %5350 = vmatpush3.bf16.msra.mxu1 %v5347_v45  ;;  %v2033_v45 = vld [vmem:[%s7315_s7 + $0x38] sm:$0xff] }
 0x3ae   : > { %5352 = vmatprep.subr.bf16.mxu1 %v5351_v48  ;;  %v5435_v46 = vpack.c.bf16 %v2033_v45, %v2032_v44  ;;  %v3485_v45 = vld [vmem:[%s7315_s7 + $0x1e0] sm:$0xff] }
 0x3b1   : > { %5354 = vmatpush3.bf16.msra.mxu1 %v5351_v48  ;;  %v2035_v48 = vld [vmem:[%s7315_s7 + $0x48] sm:$0xff] }
 0x3b2   : > { %5356 = vmatprep.subr.bf16.mxu1 %v5355_v52  ;;  %v5438_v49 = vpack.c.bf16 %v2035_v48, %v2034_v47  ;;  %v3469_v48 = vld [vmem:[%s7315_s7 + $0x160] sm:$0xff] }
 0x3b5   : > { %5358 = vmatpush3.bf16.msra.mxu1 %v5355_v52  ;;  %v2037_v52 = vld [vmem:[%s7315_s7 + $0x58] sm:$0xff] }
 0x3b6   : > { %5360 = vmatprep.subr.bf16.mxu1 %v6383_v56 }
 0x3b8   : > { %4497 = vmatmul.mubr.f32.vlgmr.msra.gmra.mrb[20].mxu1 %v4417_v27  ;;  %v3449_v27 = vld [vmem:[%s7315_s7 + $0xc0] sm:$0xff] }
 0x3b9   : > { %5362 = vmatpush3.bf16.msra.mxu1 %v6383_v56  ;;  %4507 = vmatprep.mubr.msk.f32.mxu1 %vm1484_vm1, %v1838_v53  ;;  %v5377_v56 = vpack.c.bf16 %v1927_v0, %v1926_v63  ;;  %v5414_v29 = vpack.c.bf16 %v3450_v28, %v3449_v27  ;;  %v5441_v53 = vpack.c.bf16 %v2037_v52, %v2036_v51  ;;  %v2041_v63 = vld [vmem:[%s7315_s7 + $0x78] sm:$0xff]  ;;  %v3479_v27 = vld [vmem:[%s7315_s7 + $0x1b0] sm:$0xff] }
 0x3ba   : > { %5365 = vmatprep.subr.msk.bf16.mxu1 %vm6387_vm4, %v6391_v60  ;;  %v3480_v28 = vld [vmem:[%s7315_s7 + $0x1b8] sm:$0xff]  ;;  %v3487_v52 = vld [vmem:[%s7315_s7 + $0x1f0] sm:$0xff] }
 0x3bb   : > { %5415 = vmatpush3.bf16.msra.mxu0 %v5414_v29  ;;  %v5456_v29 = vpack.c.bf16 %v3462_v25, %v3461_v24  ;;  %v3514_v24 = vld [vmem:[%s7315_s7 + $0x2c8] sm:$0xff] }
 0x3bc   : > { %5416 = vmatprep.subr.bf16.mxu0 %v5995_v14 }
 0x3bd   : > { %5368 = vmatpush3.bf16.msk.msra.mxu1 %vm6387_vm4, %v6391_v60  ;;  %v1932_v60 = vld [vmem:[#allocation7 + $0x150] sm:$0xff] }
 0x3be   : > { %5370 = vmatprep.subr.bf16.mxu1 %v5369_v55  ;;  %v5389_v7 = vpack.c.bf16 %v1933_v6, %v1932_v60  ;;  %v3474_v60 = vld [vmem:[%s7315_s7 + $0x188] sm:$0xff] }
 0x3bf   : > { %5418 = vmatpush3.bf16.msra.mxu0 %v5417_v32  ;;  %v5483_v32 = vpack.c.bf16 %v3480_v28, %v3479_v27  ;;  %v3498_v27 = vld [vmem:[%s7315_s7 + $0x248] sm:$0xff] }
 0x3c0   : > { %4508 = vmatmul.mubr.msk.f32.vlgmr.msra.gmra.mrb[22].mxu1 %vm1484_vm1, %v1839_v61  ;;  %5419 = vmatprep.subr.bf16.mxu0 %v5995_v14  ;;  %v5420_v61 = vpack.c.bf16 %v3454_v58, %v3453_v57  ;;  %v3505_v58 = vld [vmem:[%s7315_s7 + $0x280] sm:$0xff] }
 0x3c1   : > { %5372 = vmatpush3.bf16.msra.mxu1 %v5369_v55  ;;  %v5444_v55 = vpack.c.bf16 %v2039_v54, %v2038_v50  ;;  %v3471_v54 = vld [vmem:[%s7315_s7 + $0x170] sm:$0xff] }
 0x3c2   : > { %5374 = vmatprep.subr.bf16.mxu1 %v5373_v62 }
 0x3c3   : > { %5421 = vmatpush3.bf16.msra.mxu0 %v5420_v61  ;;  %v3506_v61 = vld [vmem:[%s7315_s7 + $0x288] sm:$0xff] }
 0x3c4   : > { %5422 = vmatprep.subr.bf16.mxu0 %v5995_v14 }
 0x3c5   : > { %5376 = vmatpush3.bf16.msra.mxu1 %v5373_v62  ;;  %v2040_v62 = vld [vmem:[%s7315_s7 + $0x70] sm:$0xff] }
 0x3c6   : > { %5378 = vmatprep.subr.bf16.mxu1 %v5377_v56  ;;  %v5447_v0 = vpack.c.bf16 %v2041_v63, %v2040_v62  ;;  %v3489_v63 = vld [vmem:[%s7315_s7 + $0x200] sm:$0xff] }
 0x3c9   : > { %5380 = vmatpush3.bf16.msra.mxu1 %v5377_v56  ;;  %v3455_v56 = vld [vmem:[%s7315_s7 + $0xf0] sm:$0xff] }
 0x3ca   : > { %5382 = vmatprep.subr.bf16.mxu1 %v5381_v3  ;;  %v5423_v2 = vpack.c.bf16 %v3456_v1, %v3455_v56  ;;  %v5522_v56 = vpack.c.bf16 %v3506_v61, %v3505_v58  ;;  %v3523_v61 = vld [vmem:[%s7315_s7 + $0x310] sm:$0xff] }
 0x3cc   : > { %5424 = vmatpush3.bf16.msra.mxu0 %v5423_v2  ;;  %v3507_v2 = vld [vmem:[%s7315_s7 + $0x290] sm:$0xff] }
 0x3cd   : > { %5384 = vmatpush3.bf16.msra.mxu1 %v5381_v3  ;;  %v5997_v3 = vmov 0.0   ;;  %5449 = vmatprep.subr.bf16.mxu0 %v5995_v14 }
 0x3ce   : > { %5386 = vmatprep.subr.bf16.mxu1 %v5385_v59  ;;  %4577 = vmatprep.mubr.msk.f32.mxu0 %vm5996_vm5, %v5997_v3 }
 0x3d1   : > { %5388 = vmatpush3.bf16.msra.mxu1 %v5385_v59  ;;  %v3473_v59 = vld [vmem:[%s7315_s7 + $0x180] sm:$0xff] }
 0x3d2   : > { %5390 = vmatprep.subr.bf16.mxu1 %v5389_v7  ;;  %v5474_v11 = vpack.c.bf16 %v3474_v60, %v3473_v59  ;;  %v3491_v60 = vld [vmem:[%s7315_s7 + $0x210] sm:$0xff] }
 0x3d5   : > { %5392 = vmatpush3.bf16.msra.mxu1 %v5389_v7 }
 0x3d6   : > { %5394 = vmatprep.subr.bf16.mxu1 %v5393_v10 }
 0x3d9   : > { %5396 = vmatpush3.bf16.msra.mxu1 %v5393_v10  ;;  %v3458_v10 = vld [vmem:[%s7315_s7 + $0x108] sm:$0xff] }
 0x3da   : > { %5398 = vmatprep.subr.bf16.mxu1 %v5397_v13  ;;  %v5450_v16 = vpack.c.bf16 %v3458_v10, %v3457_v9  ;;  %v3509_v9 = vld [vmem:[%s7315_s7 + $0x2a0] sm:$0xff]  ;;  %v3510_v10 = vld [vmem:[%s7315_s7 + $0x2a8] sm:$0xff] }
 0x3dd   : > { %5400 = vmatpush3.bf16.msra.mxu1 %v5397_v13  ;;  %v3475_v13 = vld [vmem:[%s7315_s7 + $0x190] sm:$0xff] }
 0x3de   : > { %5425 = vmatprep.subr.bf16.mxu1 %v5995_v14  ;;  %v5477_v20 = vpack.c.bf16 %v3476_v15, %v3475_v13  ;;  %v3493_v13 = vld [vmem:[%s7315_s7 + $0x220] sm:$0xff]  ;;  %v3494_v15 = vld [vmem:[%s7315_s7 + $0x228] sm:$0xff] }
 0x3df   : > { %v5504_v19 = vpack.c.bf16 %v3494_v15, %v3493_v13  ;;  %v3546_v13 = vld [vmem:[%s7315_s7 + $0x3c8] sm:$0xff] }
 0x493   : > { %v4509_v34 = vpop.f32.mrb[22].mxu1 }
 0x494   : > { %v1912_v37 = vpop.f32.mrb[23].mxu1 }
 0x495   : > { %4542 = vmatprep.mubr.f32.mxu1 %v1912_v37  ;;  %v3466_v37 = vld [vmem:[%s7315_s7 + $0x148] sm:$0xff] }
 0x496   : > { %4543 = vmatmul.mubr.f32.vlgmr.msra.gmra.mrb[20].mxu1 %v4509_v34  ;;  %v5459_v34 = vpack.c.bf16 %v3464_v31, %v3463_v30  ;;  %v3516_v30 = vld [vmem:[%s7315_s7 + $0x2d8] sm:$0xff] }
 0x497   : > { %5427 = vmatpush3.bf16.msra.mxu1 %v5426_v36  ;;  %4612 = vmatprep.mubr.msk.f32.mxu1 %vm5996_vm5, %v5997_v3  ;;  %v3465_v36 = vld [vmem:[%s7315_s7 + $0x140] sm:$0xff] }
 0x498   : > { %5428 = vmatprep.subr.bf16.mxu1 %v5995_v14  ;;  %v5462_v41 = vpack.c.bf16 %v3466_v37, %v3465_v36  ;;  %v3518_v36 = vld [vmem:[%s7315_s7 + $0x2e8] sm:$0xff] }
 0x49b   : > { %5430 = vmatpush3.bf16.msra.mxu1 %v5429_v39  ;;  %v3484_v39 = vld [vmem:[%s7315_s7 + $0x1d8] sm:$0xff] }
 0x49c   : > { %5431 = vmatprep.subr.bf16.mxu1 %v5995_v14  ;;  %v5489_v44 = vpack.c.bf16 %v3484_v39, %v3483_v40  ;;  %v3502_v40 = vld [vmem:[%s7315_s7 + $0x268] sm:$0xff] }
 0x49f   : > { %5433 = vmatpush3.bf16.msra.mxu1 %v5432_v43  ;;  %v3468_v43 = vld [vmem:[%s7315_s7 + $0x158] sm:$0xff] }
 0x4a0   : > { %5434 = vmatprep.subr.bf16.mxu1 %v5995_v14  ;;  %v5465_v47 = vpack.c.bf16 %v3468_v43, %v3467_v42  ;;  %v3520_v42 = vld [vmem:[%s7315_s7 + $0x2f8] sm:$0xff] }
 0x4a3   : > { %5436 = vmatpush3.bf16.msra.mxu1 %v5435_v46  ;;  %v3486_v46 = vld [vmem:[%s7315_s7 + $0x1e8] sm:$0xff] }
 0x4a4   : > { %5437 = vmatprep.subr.bf16.mxu1 %v5995_v14  ;;  %v5492_v51 = vpack.c.bf16 %v3486_v46, %v3485_v45  ;;  %v3504_v45 = vld [vmem:[%s7315_s7 + $0x278] sm:$0xff] }
 0x4a7   : > { %5439 = vmatpush3.bf16.msra.mxu1 %v5438_v49  ;;  %v3470_v49 = vld [vmem:[%s7315_s7 + $0x168] sm:$0xff] }
 0x4a8   : > { %5440 = vmatprep.subr.bf16.mxu1 %v5995_v14  ;;  %v5468_v50 = vpack.c.bf16 %v3470_v49, %v3469_v48  ;;  %v3538_v48 = vld [vmem:[%s7315_s7 + $0x388] sm:$0xff] }
 0x4ab   : > { %5442 = vmatpush3.bf16.msra.mxu1 %v5441_v53  ;;  %v3488_v53 = vld [vmem:[%s7315_s7 + $0x1f8] sm:$0xff] }
 0x4ac   : > { %5443 = vmatprep.subr.bf16.mxu1 %v5995_v14  ;;  %v5495_v57 = vpack.c.bf16 %v3488_v53, %v3487_v52  ;;  %v3522_v52 = vld [vmem:[%s7315_s7 + $0x308] sm:$0xff] }
 0x4af   : > { %5445 = vmatpush3.bf16.msra.mxu1 %v5444_v55  ;;  %v3472_v55 = vld [vmem:[%s7315_s7 + $0x178] sm:$0xff] }
 0x4b0   : > { %5446 = vmatprep.subr.bf16.mxu1 %v5995_v14  ;;  %v5471_v62 = vpack.c.bf16 %v3472_v55, %v3471_v54  ;;  %v3539_v54 = vld [vmem:[%s7315_s7 + $0x390] sm:$0xff]  ;;  %v3540_v55 = vld [vmem:[%s7315_s7 + $0x398] sm:$0xff] }
 0x4b3   : > { %5448 = vmatpush3.bf16.msra.mxu1 %v5447_v0  ;;  %v3490_v0 = vld [vmem:[%s7315_s7 + $0x208] sm:$0xff] }
 0x4b4   : > { %5473 = vmatprep.subr.bf16.mxu1 %v5995_v14 }
 0x569   : > { %v4544_v5 = vpop.f32.mrb[20].mxu1 }
 0x56a   : > { %v6547_v6 = vadd.f32 %v4544_v5, %v3440_v4  ;;  %v2004_v7 = vpop.f32.mrb[21].mxu1  ;;  %v5498_v5 = vpack.c.bf16 %v3490_v0, %v3489_v63  ;;  %v5573_v63 = vpack.c.bf16 %v3540_v55, %v3539_v54  ;;  %v3541_v0 = vld [vmem:[%s7315_s7 + $0x3a0] sm:$0xff]  ;;  %v3558_v54 = vld [vmem:[%s7315_s7 + $0x428] sm:$0xff] }
 0x56b   : > { %v2022_v8 = vadd.f32 %v3440_v4, %v2004_v7  ;;  %v3508_v4 = vld [vmem:[%s7315_s7 + $0x298] sm:$0xff] }
 0x56c   : > { %v3492_v7 = vld [vmem:[%s7315_s7 + $0x218] sm:$0xff] }
 0x56d   : > { %v6555_v12 = vmax.f32 %v2022_v8, 0.0  ;;  %v5525_v8 = vpack.c.bf16 %v3508_v4, %v3507_v2  ;;  %v3525_v2 = vld [vmem:[%s7315_s7 + $0x320] sm:$0xff]  ;;  %v3526_v4 = vld [vmem:[%s7315_s7 + $0x328] sm:$0xff] }
 0x56f   : > { %4613 = vmatmul.mubr.f32.vlgmr.msra.gmra.mrb[24].mxu1 %v6555_v12  ;;  %v2060_v17 = vrot.slane %v6555_v12, 1  ;;  %v2309_v1 = vrot.slane %v6555_v12, 3  ;;  %v2219_v59 = vrot.slane %v6555_v12, 2  ;;  %v2399_v58 = vrot.slane %v6555_v12, 4 }
 0x570   : > { %5475 = vmatpush3.bf16.msra.mxu1 %v5474_v11  ;;  %4682 = vmatprep.mubr.msk.f32.mxu1 %vm5996_vm5, %v5997_v3  ;;  %v5501_v11 = vpack.c.bf16 %v3492_v7, %v3491_v60  ;;  %v3544_v60 = vld [vmem:[%s7315_s7 + $0x3b8] sm:$0xff]  ;;  %v5552_v7 = vpack.c.bf16 %v3526_v4, %v3525_v2  ;;  %v3561_v4 = vld [vmem:[%s7315_s7 + $0x440] sm:$0xff] }
 0x571   : > { %4578 = vmatmul.mubr.f32.vlgmr.msra.gmra.mrb[8].mxu0 %v2060_v17  ;;  %5476 = vmatprep.subr.bf16.mxu1 %v5995_v14  ;;  %v3511_v17 = vld [vmem:[%s7315_s7 + $0x2b0] sm:$0xff] }
 0x572   : > { %5451 = vmatpush3.bf16.msra.mxu0 %v5450_v16  ;;  %4647 = vmatprep.mubr.msk.f32.mxu0 %vm5996_vm5, %v5997_v3  ;;  %v5528_v16 = vpack.c.bf16 %v3510_v10, %v3509_v9  ;;  %v5531_v22 = vpack.c.bf16 %v3512_v18, %v3511_v17  ;;  %v3528_v9 = vld [vmem:[%s7315_s7 + $0x338] sm:$0xff]  ;;  %v3530_v17 = vld [vmem:[%s7315_s7 + $0x348] sm:$0xff] }
 0x573   : > { %5452 = vmatprep.subr.bf16.mxu0 %v5995_v14 }
 0x574   : > { %5478 = vmatpush3.bf16.msra.mxu1 %v5477_v20  ;;  %v3495_v20 = vld [vmem:[%s7315_s7 + $0x230] sm:$0xff] }
 0x575   : > { %5479 = vmatprep.subr.bf16.mxu1 %v5995_v14  ;;  %v5507_v25 = vpack.c.bf16 %v3496_v21, %v3495_v20  ;;  %v3548_v20 = vld [vmem:[%s7315_s7 + $0x3d8] sm:$0xff] }
 0x576   : > { %5454 = vmatpush3.bf16.msra.mxu0 %v5453_v23  ;;  %v3513_v23 = vld [vmem:[%s7315_s7 + $0x2c0] sm:$0xff] }
 0x577   : > { %5455 = vmatprep.subr.bf16.mxu0 %v5995_v14  ;;  %v5534_v28 = vpack.c.bf16 %v3514_v24, %v3513_v23  ;;  %v3532_v23 = vld [vmem:[%s7315_s7 + $0x358] sm:$0xff] }
 0x578   : > { %5481 = vmatpush3.bf16.msra.mxu1 %v5480_v26  ;;  %v3497_v26 = vld [vmem:[%s7315_s7 + $0x240] sm:$0xff] }
 0x579   : > { %5482 = vmatprep.subr.bf16.mxu1 %v5995_v14  ;;  %v5510_v31 = vpack.c.bf16 %v3498_v27, %v3497_v26  ;;  %v3550_v26 = vld [vmem:[%s7315_s7 + $0x3e8] sm:$0xff] }
 0x57a   : > { %5457 = vmatpush3.bf16.msra.mxu0 %v5456_v29  ;;  %v3515_v29 = vld [vmem:[%s7315_s7 + $0x2d0] sm:$0xff] }
 0x57b   : > { %5458 = vmatprep.subr.bf16.mxu0 %v5995_v14  ;;  %v5537_v35 = vpack.c.bf16 %v3516_v30, %v3515_v29  ;;  %v3534_v29 = vld [vmem:[%s7315_s7 + $0x368] sm:$0xff] }
 0x57c   : > { %5484 = vmatpush3.bf16.msra.mxu1 %v5483_v32  ;;  %v3499_v32 = vld [vmem:[%s7315_s7 + $0x250] sm:$0xff] }
 0x57d   : > { %5485 = vmatprep.subr.bf16.mxu1 %v5995_v14  ;;  %v5513_v37 = vpack.c.bf16 %v3500_v33, %v3499_v32  ;;  %v3552_v32 = vld [vmem:[%s7315_s7 + $0x3f8] sm:$0xff] }
 0x57e   : > { %5460 = vmatpush3.bf16.msra.mxu0 %v5459_v34  ;;  %v3517_v34 = vld [vmem:[%s7315_s7 + $0x2e0] sm:$0xff] }
 0x57f   : > { %5461 = vmatprep.subr.bf16.mxu0 %v5995_v14  ;;  %v5540_v39 = vpack.c.bf16 %v3518_v36, %v3517_v34  ;;  %v3536_v34 = vld [vmem:[%s7315_s7 + $0x378] sm:$0xff] }
 0x580   : > { %5487 = vmatpush3.bf16.msra.mxu1 %v5486_v38  ;;  %v3501_v38 = vld [vmem:[%s7315_s7 + $0x260] sm:$0xff] }
 0x581   : > { %5488 = vmatprep.subr.bf16.mxu1 %v5995_v14  ;;  %v5516_v43 = vpack.c.bf16 %v3502_v40, %v3501_v38  ;;  %v3570_v38 = vld [vmem:[%s7315_s7 + $0x488] sm:$0xff] }
 0x582   : > { %5463 = vmatpush3.bf16.msra.mxu0 %v5462_v41  ;;  %v3519_v41 = vld [vmem:[%s7315_s7 + $0x2f0] sm:$0xff] }
 0x583   : > { %5464 = vmatprep.subr.bf16.mxu0 %v5995_v14  ;;  %v5543_v46 = vpack.c.bf16 %v3520_v42, %v3519_v41  ;;  %v3554_v41 = vld [vmem:[%s7315_s7 + $0x408] sm:$0xff] }
 0x584   : > { %5490 = vmatpush3.bf16.msra.mxu1 %v5489_v44  ;;  %v3503_v44 = vld [vmem:[%s7315_s7 + $0x270] sm:$0xff] }
 0x585   : > { %5491 = vmatprep.subr.bf16.mxu1 %v5995_v14  ;;  %v5519_v49 = vpack.c.bf16 %v3504_v45, %v3503_v44  ;;  %v3571_v44 = vld [vmem:[%s7315_s7 + $0x490] sm:$0xff]  ;;  %v3572_v45 = vld [vmem:[%s7315_s7 + $0x498] sm:$0xff] }
 0x586   : > { %5466 = vmatpush3.bf16.msra.mxu0 %v5465_v47  ;;  %v3537_v47 = vld [vmem:[%s7315_s7 + $0x380] sm:$0xff] }
 0x587   : > { %5467 = vmatprep.subr.bf16.mxu0 %v5995_v14  ;;  %v5570_v53 = vpack.c.bf16 %v3538_v48, %v3537_v47  ;;  %v2579_v47 = vrot.slane %v6555_v12, 6  ;;  %v3555_v48 = vld [vmem:[%s7315_s7 + $0x410] sm:$0xff] }
 0x588   : > { %5493 = vmatpush3.bf16.msra.mxu1 %v5492_v51  ;;  %v3521_v51 = vld [vmem:[%s7315_s7 + $0x300] sm:$0xff] }
 0x589   : > { %5494 = vmatprep.subr.bf16.mxu1 %v5995_v14 }
 0x58a   : > { %5469 = vmatpush3.bf16.msra.mxu0 %v5468_v50  ;;  %v2489_v50 = vrot.slane %v6555_v12, 5 }
 0x58b   : > { %5470 = vmatprep.subr.bf16.mxu0 %v5995_v14 }
 0x58c   : > { %5496 = vmatpush3.bf16.msra.mxu1 %v5495_v57  ;;  %v5546_v57 = vpack.c.bf16 %v3522_v52, %v3521_v51  ;;  %v5621_v51 = vpack.c.bf16 %v3572_v45, %v3571_v44  ;;  %v3574_v52 = vld [vmem:[%s7315_s7 + $0x4a8] sm:$0xff]  ;;  %v3607_v45 = vld [vmem:[%s7315_s7 + $0x5b0] sm:$0xff] }
 0x58d   : > { %5521 = vmatprep.subr.bf16.mxu1 %v5995_v14 }
 0x58e   : > { %5472 = vmatpush3.bf16.msra.mxu0 %v5471_v62  ;;  %v3524_v62 = vld [vmem:[%s7315_s7 + $0x318] sm:$0xff] }
 0x58f   : > { %4683 = vmatmul.mubr.f32.vlgmr.msra.gmra.mrb[26].mxu1 %v2309_v1  ;;  %5497 = vmatprep.subr.bf16.mxu0 %v5995_v14  ;;  %v5549_v1 = vpack.c.bf16 %v3524_v62, %v3523_v61  ;;  %v3559_v62 = vld [vmem:[%s7315_s7 + $0x430] sm:$0xff] }
 0x590   : > { %5523 = vmatpush3.bf16.msra.mxu1 %v5522_v56  ;;  %4752 = vmatprep.mubr.msk.f32.mxu1 %vm5996_vm5, %v5997_v3  ;;  %v3542_v56 = vld [vmem:[%s7315_s7 + $0x3a8] sm:$0xff] }
 0x591   : > { %4648 = vmatmul.mubr.f32.vlgmr.msra.gmra.mrb[10].mxu0 %v2219_v59  ;;  %5524 = vmatprep.subr.bf16.mxu1 %v5995_v14  ;;  %v3543_v59 = vld [vmem:[%s7315_s7 + $0x3b0] sm:$0xff] }
 0x592   : > { %5499 = vmatpush3.bf16.msra.mxu0 %v5498_v5  ;;  %4717 = vmatprep.mubr.msk.f32.mxu0 %vm5996_vm5, %v5997_v3  ;;  %v5576_v5 = vpack.c.bf16 %v3542_v56, %v3541_v0  ;;  %v5579_v10 = vpack.c.bf16 %v3544_v60, %v3543_v59  ;;  %v3577_v56 = vld [vmem:[%s7315_s7 + $0x4c0] sm:$0xff]  ;;  %v3579_v60 = vld [vmem:[%s7315_s7 + $0x4d0] sm:$0xff] }
 0x593   : > { %5500 = vmatprep.subr.bf16.mxu0 %v5995_v14 }
 0x594   : > { %5526 = vmatpush3.bf16.msra.mxu1 %v5525_v8  ;;  %v3527_v8 = vld [vmem:[%s7315_s7 + $0x330] sm:$0xff] }
 0x595   : > { %5527 = vmatprep.subr.bf16.mxu1 %v5995_v14  ;;  %v5555_v15 = vpack.c.bf16 %v3528_v9, %v3527_v8  ;;  %v3563_v9 = vld [vmem:[%s7315_s7 + $0x450] sm:$0xff] }
 0x596   : > { %5502 = vmatpush3.bf16.msra.mxu0 %v5501_v11  ;;  %v3545_v11 = vld [vmem:[%s7315_s7 + $0x3c0] sm:$0xff] }
 0x597   : > { %5503 = vmatprep.subr.bf16.mxu0 %v5995_v14  ;;  %v5582_v18 = vpack.c.bf16 %v3546_v13, %v3545_v11  ;;  %v3581_v13 = vld [vmem:[%s7315_s7 + $0x4e0] sm:$0xff] }
 0x598   : > { %5529 = vmatpush3.bf16.msra.mxu1 %v5528_v16  ;;  %v3529_v16 = vld [vmem:[%s7315_s7 + $0x340] sm:$0xff] }
 0x599   : > { %5530 = vmatprep.subr.bf16.mxu1 %v5995_v14  ;;  %v5558_v21 = vpack.c.bf16 %v3530_v17, %v3529_v16  ;;  %v3565_v17 = vld [vmem:[%s7315_s7 + $0x460] sm:$0xff] }
 0x59a   : > { %5505 = vmatpush3.bf16.msra.mxu0 %v5504_v19  ;;  %v3547_v19 = vld [vmem:[%s7315_s7 + $0x3d0] sm:$0xff] }
 0x59b   : > { %5506 = vmatprep.subr.bf16.mxu0 %v5995_v14  ;;  %v5585_v24 = vpack.c.bf16 %v3548_v20, %v3547_v19  ;;  %v3583_v20 = vld [vmem:[%s7315_s7 + $0x4f0] sm:$0xff] }
 0x59c   : > { %5532 = vmatpush3.bf16.msra.mxu1 %v5531_v22  ;;  %v3531_v22 = vld [vmem:[%s7315_s7 + $0x350] sm:$0xff] }
 0x59d   : > { %5533 = vmatprep.subr.bf16.mxu1 %v5995_v14  ;;  %v5561_v27 = vpack.c.bf16 %v3532_v23, %v3531_v22  ;;  %v3567_v23 = vld [vmem:[%s7315_s7 + $0x470] sm:$0xff] }
 0x59e   : > { %5508 = vmatpush3.bf16.msra.mxu0 %v5507_v25  ;;  %v3549_v25 = vld [vmem:[%s7315_s7 + $0x3e0] sm:$0xff] }
 0x59f   : > { %5509 = vmatprep.subr.bf16.mxu0 %v5995_v14  ;;  %v5588_v30 = vpack.c.bf16 %v3550_v26, %v3549_v25  ;;  %v7014_v26 = vmax.f32 %v6547_v6, 0.0  ;;  %v3586_v6 = vld [vmem:[%s7315_s7 + $0x508] sm:$0xff] }
 0x5a0   : > { %5535 = vmatpush3.bf16.msra.mxu1 %v5534_v28  ;;  %v3533_v28 = vld [vmem:[%s7315_s7 + $0x360] sm:$0xff] }
 0x5a1   : > { %5536 = vmatprep.subr.bf16.mxu1 %v5995_v14  ;;  %v5564_v33 = vpack.c.bf16 %v3534_v29, %v3533_v28  ;;  %v3602_v28 = vld [vmem:[%s7315_s7 + $0x588] sm:$0xff] }
 0x5a2   : > { %5511 = vmatpush3.bf16.msra.mxu0 %v5510_v31  ;;  %v3551_v31 = vld [vmem:[%s7315_s7 + $0x3f0] sm:$0xff] }
 0x5a3   : > { %5512 = vmatprep.subr.bf16.mxu0 %v5995_v14  ;;  %v5591_v36 = vpack.c.bf16 %v3552_v32, %v3551_v31  ;;  %v2848_v32 = vrot.slane %v7014_v26, 1 }
 0x5a4   : > { %5538 = vmatpush3.bf16.msra.mxu1 %v5537_v35  ;;  %v3535_v35 = vld [vmem:[%s7315_s7 + $0x370] sm:$0xff] }
 0x5a5   : > { %5539 = vmatprep.subr.bf16.mxu1 %v5995_v14  ;;  %v5567_v40 = vpack.c.bf16 %v3536_v34, %v3535_v35  ;;  %v3604_v35 = vld [vmem:[%s7315_s7 + $0x598] sm:$0xff] }
 0x5a6   : > { %5514 = vmatpush3.bf16.msra.mxu0 %v5513_v37  ;;  %v3569_v37 = vld [vmem:[%s7315_s7 + $0x480] sm:$0xff] }
 0x5a7   : > { %5515 = vmatprep.subr.bf16.mxu0 %v5995_v14  ;;  %v5618_v42 = vpack.c.bf16 %v3570_v38, %v3569_v37  ;;  %v3588_v37 = vld [vmem:[%s7315_s7 + $0x518] sm:$0xff] }
 0x5a8   : > { %5541 = vmatpush3.bf16.msra.mxu1 %v5540_v39  ;;  %v3553_v39 = vld [vmem:[%s7315_s7 + $0x400] sm:$0xff] }
 0x5a9   : > { %5542 = vmatprep.subr.bf16.mxu1 %v5995_v14 }
 0x5aa   : > { %5517 = vmatpush3.bf16.msra.mxu0 %v5516_v43  ;;  %v2669_v43 = vrot.slane %v6555_v12, 7  ;;  %v3573_v12 = vld [vmem:[%s7315_s7 + $0x4a0] sm:$0xff] }
 0x5ab   : > { %5518 = vmatprep.subr.bf16.mxu0 %v5995_v14  ;;  %v5624_v55 = vpack.c.bf16 %v3574_v52, %v3573_v12  ;;  %v3609_v12 = vld [vmem:[%s7315_s7 + $0x5c0] sm:$0xff]  ;;  %v3610_v52 = vld [vmem:[%s7315_s7 + $0x5c8] sm:$0xff] }
 0x5ac   : > { %5544 = vmatpush3.bf16.msra.mxu1 %v5543_v46  ;;  %v5594_v46 = vpack.c.bf16 %v3554_v41, %v3553_v39  ;;  %v3606_v39 = vld [vmem:[%s7315_s7 + $0x5a8] sm:$0xff] }
 0x5ad   : > { %5569 = vmatprep.subr.bf16.mxu1 %v5995_v14 }
 0x5ae   : > { %5520 = vmatpush3.bf16.msra.mxu0 %v5519_v49  ;;  %v3556_v49 = vld [vmem:[%s7315_s7 + $0x418] sm:$0xff] }
 0x5af   : > { %4753 = vmatmul.mubr.f32.vlgmr.msra.gmra.mrb[28].mxu1 %v2489_v50  ;;  %5545 = vmatprep.subr.bf16.mxu0 %v5995_v14  ;;  %v3557_v50 = vld [vmem:[%s7315_s7 + $0x420] sm:$0xff] }
 0x5b0   : > { %5571 = vmatpush3.bf16.msra.mxu1 %v5570_v53  ;;  %4822 = vmatprep.mubr.msk.f32.mxu1 %vm5996_vm5, %v5997_v3  ;;  %v5597_v53 = vpack.c.bf16 %v3556_v49, %v3555_v48  ;;  %v5600_v61 = vpack.c.bf16 %v3558_v54, %v3557_v50  ;;  %v3591_v48 = vld [vmem:[%s7315_s7 + $0x530] sm:$0xff]  ;;  %v3592_v49 = vld [vmem:[%s7315_s7 + $0x538] sm:$0xff]  ;;  %v3593_v50 = vld [vmem:[%s7315_s7 + $0x540] sm:$0xff] }
 0x5b1   : > { %4718 = vmatmul.mubr.f32.vlgmr.msra.gmra.mrb[12].mxu0 %v2399_v58  ;;  %5572 = vmatprep.subr.bf16.mxu1 %v5995_v14  ;;  %v3576_v58 = vld [vmem:[%s7315_s7 + $0x4b8] sm:$0xff]  ;;  %v3594_v54 = vld [vmem:[%s7315_s7 + $0x548] sm:$0xff] }
 0x5b2   : > { %5547 = vmatpush3.bf16.msra.mxu0 %v5546_v57  ;;  %4787 = vmatprep.mubr.msk.f32.mxu0 %vm5996_vm5, %v5997_v3  ;;  %v3575_v57 = vld [vmem:[%s7315_s7 + $0x4b0] sm:$0xff] }
 0x5b3   : > { %5548 = vmatprep.subr.bf16.mxu0 %v5995_v14  ;;  %v5627_v0 = vpack.c.bf16 %v3576_v58, %v3575_v57  ;;  %v3611_v57 = vld [vmem:[%s7315_s7 + $0x5d0] sm:$0xff]  ;;  %v3612_v58 = vld [vmem:[%s7315_s7 + $0x5d8] sm:$0xff] }
 0x5b4   : > { %5574 = vmatpush3.bf16.msra.mxu1 %v5573_v63  ;;  %v3560_v63 = vld [vmem:[%s7315_s7 + $0x438] sm:$0xff] }
 0x5b5   : > { %5575 = vmatprep.subr.bf16.mxu1 %v5995_v14  ;;  %v5603_v2 = vpack.c.bf16 %v3560_v63, %v3559_v62  ;;  %v3595_v62 = vld [vmem:[%s7315_s7 + $0x550] sm:$0xff]  ;;  %v3596_v63 = vld [vmem:[%s7315_s7 + $0x558] sm:$0xff] }
 0x5b6   : > { %5550 = vmatpush3.bf16.msra.mxu0 %v5549_v1  ;;  %v3578_v1 = vld [vmem:[%s7315_s7 + $0x4c8] sm:$0xff] }
 0x5b7   : > { %5551 = vmatprep.subr.bf16.mxu0 %v5995_v14  ;;  %v5630_v59 = vpack.c.bf16 %v3578_v1, %v3577_v56  ;;  %v3613_v56 = vld [vmem:[%s7315_s7 + $0x5e0] sm:$0xff]  ;;  %v3614_v1 = vld [vmem:[%s7315_s7 + $0x5e8] sm:$0xff] }
 0x5b8   : > { %5577 = vmatpush3.bf16.msra.mxu1 %v5576_v5  ;;  %v3562_v5 = vld [vmem:[%s7315_s7 + $0x448] sm:$0xff] }
 0x5b9   : > { %5578 = vmatprep.subr.bf16.mxu1 %v5995_v14  ;;  %v5606_v8 = vpack.c.bf16 %v3562_v5, %v3561_v4  ;;  %v3597_v4 = vld [vmem:[%s7315_s7 + $0x560] sm:$0xff]  ;;  %v3598_v5 = vld [vmem:[%s7315_s7 + $0x568] sm:$0xff] }
 0x5ba   : > { %5553 = vmatpush3.bf16.msra.mxu0 %v5552_v7  ;;  %v3580_v7 = vld [vmem:[%s7315_s7 + $0x4d8] sm:$0xff] }
 0x5bb   : > { %5554 = vmatprep.subr.bf16.mxu0 %v5995_v14  ;;  %v5633_v11 = vpack.c.bf16 %v3580_v7, %v3579_v60  ;;  %v3615_v60 = vld [vmem:[%s7315_s7 + $0x5f0] sm:$0xff]  ;;  %v3616_v7 = vld [vmem:[%s7315_s7 + $0x5f8] sm:$0xff] }
 0x5bc   : > { %5580 = vmatpush3.bf16.msra.mxu1 %v5579_v10  ;;  %v3564_v10 = vld [vmem:[%s7315_s7 + $0x458] sm:$0xff] }
 0x5bd   : > { %5581 = vmatprep.subr.bf16.mxu1 %v5995_v14  ;;  %v5609_v16 = vpack.c.bf16 %v3564_v10, %v3563_v9  ;;  %v3599_v9 = vld [vmem:[%s7315_s7 + $0x570] sm:$0xff]  ;;  %v3600_v10 = vld [vmem:[%s7315_s7 + $0x578] sm:$0xff] }
 0x5be   : > { %5556 = vmatpush3.bf16.msra.mxu0 %v5555_v15  ;;  %v3582_v15 = vld [vmem:[%s7315_s7 + $0x4e8] sm:$0xff] }
 0x5bf   : > { %5557 = vmatprep.subr.bf16.mxu0 %v5995_v14  ;;  %v5636_v19 = vpack.c.bf16 %v3582_v15, %v3581_v13  ;;  %v5663_v13 = vpack.c.bf16 %v3600_v10, %v3599_v9  ;;  %v3617_v15 = vld [vmem:[%s7315_s7 + $0x600] sm:$0xff]  ;;  %v3207_v9 = vld [vmem:[%s7317_s9 + $0x68] sm:$0xff] }
 0x5c0   : > { %5583 = vmatpush3.bf16.msra.mxu1 %v5582_v18  ;;  %v3566_v18 = vld [vmem:[%s7315_s7 + $0x468] sm:$0xff] }
 0x5c1   : > { %5584 = vmatprep.subr.bf16.mxu1 %v5995_v14  ;;  %v5612_v22 = vpack.c.bf16 %v3566_v18, %v3565_v17  ;;  %v3028_v17 = vrot.slane %v7014_v26, 3 }
 0x5c2   : > { %5559 = vmatpush3.bf16.msra.mxu0 %v5558_v21  ;;  %v3584_v21 = vld [vmem:[%s7315_s7 + $0x4f8] sm:$0xff] }
 0x5c3   : > { %5560 = vmatprep.subr.bf16.mxu0 %v5995_v14  ;;  %v5639_v25 = vpack.c.bf16 %v3584_v21, %v3583_v20  ;;  %v3619_v20 = vld [vmem:[%s7315_s7 + $0x610] sm:$0xff]  ;;  %v3620_v21 = vld [vmem:[%s7315_s7 + $0x618] sm:$0xff] }
 0x5c4   : > { %5586 = vmatpush3.bf16.msra.mxu1 %v5585_v24  ;;  %v3568_v24 = vld [vmem:[%s7315_s7 + $0x478] sm:$0xff] }
 0x5c5   : > { %5587 = vmatprep.subr.bf16.mxu1 %v5995_v14  ;;  %v5615_v29 = vpack.c.bf16 %v3568_v24, %v3567_v23  ;;  %v3621_v23 = vld [vmem:[%s7315_s7 + $0x620] sm:$0xff]  ;;  %v3622_v24 = vld [vmem:[%s7315_s7 + $0x628] sm:$0xff] }
 0x5c6   : > { %5562 = vmatpush3.bf16.msra.mxu0 %v5561_v27  ;;  %v3601_v27 = vld [vmem:[%s7315_s7 + $0x580] sm:$0xff] }
 0x5c7   : > { %5563 = vmatprep.subr.bf16.mxu0 %v5995_v14  ;;  %v5666_v31 = vpack.c.bf16 %v3602_v28, %v3601_v27  ;;  %v3623_v27 = vld [vmem:[%s7315_s7 + $0x630] sm:$0xff] }
 0x5c8   : > { %5589 = vmatpush3.bf16.msra.mxu1 %v5588_v30  ;;  %v3585_v30 = vld [vmem:[%s7315_s7 + $0x500] sm:$0xff] }
 0x5c9   : > { %5590 = vmatprep.subr.bf16.mxu1 %v5995_v14  ;;  %v5642_v34 = vpack.c.bf16 %v3586_v6, %v3585_v30  ;;  %v3626_v30 = vld [vmem:[%s7315_s7 + $0x648] sm:$0xff] }
 0x5ca   : > { %5565 = vmatpush3.bf16.msra.mxu0 %v5564_v33  ;;  %v3603_v33 = vld [vmem:[%s7315_s7 + $0x590] sm:$0xff] }
 0x5cb   : > { %5566 = vmatprep.subr.bf16.mxu0 %v5995_v14  ;;  %v5669_v38 = vpack.c.bf16 %v3604_v35, %v3603_v33  ;;  %v3629_v35 = vld [vmem:[%s7315_s7 + $0x660] sm:$0xff] }
 0x5cc   : > { %5592 = vmatpush3.bf16.msra.mxu1 %v5591_v36  ;;  %v3587_v36 = vld [vmem:[%s7315_s7 + $0x510] sm:$0xff] }
 0x5cd   : > { %5617 = vmatprep.subr.bf16.mxu1 %v5995_v14  ;;  %v5645_v41 = vpack.c.bf16 %v3588_v37, %v3587_v36  ;;  %v3631_v37 = vld [vmem:[%s7315_s7 + $0x670] sm:$0xff] }
 0x5ce   : > { %5568 = vmatpush3.bf16.msra.mxu0 %v5567_v40  ;;  %v3605_v40 = vld [vmem:[%s7315_s7 + $0x5a0] sm:$0xff] }
 0x5cf   : > { %4823 = vmatmul.mubr.f32.vlgmr.msra.gmra.mrb[30].mxu1 %v2669_v43  ;;  %5593 = vmatprep.subr.bf16.mxu0 %v5995_v14  ;;  %v3590_v43 = vld [vmem:[%s7315_s7 + $0x528] sm:$0xff]  ;;  %v5672_v44 = vpack.c.bf16 %v3606_v39, %v3605_v40  ;;  %v3118_v39 = vrot.slane %v7014_v26, 4 }
 0x5d0   : > { %5619 = vmatpush3.bf16.msra.mxu1 %v5618_v42  ;;  %4892 = vmatprep.mubr.msk.f32.mxu1 %vm5996_vm5, %v5997_v3  ;;  %v3589_v42 = vld [vmem:[%s7315_s7 + $0x520] sm:$0xff] }
 0x5d1   : > { %4788 = vmatmul.mubr.f32.vlgmr.msra.gmra.mrb[14].mxu0 %v2579_v47  ;;  %5620 = vmatprep.subr.bf16.mxu1 %v5995_v14  ;;  %v5648_v47 = vpack.c.bf16 %v3590_v43, %v3589_v42 }
 0x5d2   : > { %5595 = vmatpush3.bf16.msra.mxu0 %v5594_v46  ;;  %4857 = vmatprep.mubr.msk.f32.mxu0 %vm5996_vm5, %v5997_v3  ;;  %v3608_v46 = vld [vmem:[%s7315_s7 + $0x5b8] sm:$0xff] }
 0x5d3   : > { %5596 = vmatprep.subr.bf16.mxu0 %v5995_v14 }
 0x5d4   : > { %5622 = vmatpush3.bf16.msra.mxu1 %v5621_v51  ;;  %v5675_v51 = vpack.c.bf16 %v3608_v46, %v3607_v45 }
 0x5d5   : > { %5623 = vmatprep.subr.bf16.mxu1 %v5995_v14 }
 0x5d6   : > { %5598 = vmatpush3.bf16.msra.mxu0 %v5597_v53  ;;  %v5651_v53 = vpack.c.bf16 %v3592_v49, %v3591_v48 }
 0x5d7   : > { %5599 = vmatprep.subr.bf16.mxu0 %v5995_v14 }
 0x5d8   : > { %5625 = vmatpush3.bf16.msra.mxu1 %v5624_v55  ;;  %v5678_v55 = vpack.c.bf16 %v3610_v52, %v3609_v12  ;;  %v3194_v12 = vld [vmem:[%s7317_s9] sm:$0xff]  ;;  %v3195_v52 = vld [vmem:[%s7317_s9 + $0x8] sm:$0xff] }
 0x5d9   : > { %5626 = vmatprep.subr.bf16.mxu1 %v5995_v14 }
 0x5da   : > { %5601 = vmatpush3.bf16.msra.mxu0 %v5600_v61  ;;  %v5654_v61 = vpack.c.bf16 %v3594_v54, %v3593_v50  ;;  %v3197_v50 = vld [vmem:[%s7317_s9 + $0x18] sm:$0xff] }
 0x5db   : > { %5602 = vmatprep.subr.bf16.mxu0 %v5995_v14 }
 0x5dc   : > { %5628 = vmatpush3.bf16.msra.mxu1 %v5627_v0  ;;  %v5681_v0 = vpack.c.bf16 %v3612_v58, %v3611_v57  ;;  %v3198_v57 = vld [vmem:[%s7317_s9 + $0x20] sm:$0xff]  ;;  %v3199_v58 = vld [vmem:[%s7317_s9 + $0x28] sm:$0xff] }
 0x5dd   : > { %5629 = vmatprep.subr.bf16.mxu1 %v5995_v14 }
 0x5de   : > { %5604 = vmatpush3.bf16.msra.mxu0 %v5603_v2  ;;  %v5657_v2 = vpack.c.bf16 %v3596_v63, %v3595_v62  ;;  %v3200_v62 = vld [vmem:[%s7317_s9 + $0x30] sm:$0xff]  ;;  %v3201_v63 = vld [vmem:[%s7317_s9 + $0x38] sm:$0xff] }
 0x5df   : > { %5605 = vmatprep.subr.bf16.mxu0 %v5995_v14 }
 0x5e0   : > { %5631 = vmatpush3.bf16.msra.mxu1 %v5630_v59  ;;  %v5684_v59 = vpack.c.bf16 %v3614_v1, %v3613_v56  ;;  %v3202_v56 = vld [vmem:[%s7317_s9 + $0x40] sm:$0xff]  ;;  %v3203_v1 = vld [vmem:[%s7317_s9 + $0x48] sm:$0xff] }
 0x5e1   : > { %5632 = vmatprep.subr.bf16.mxu1 %v5995_v14 }
 0x5e2   : > { %5607 = vmatpush3.bf16.msra.mxu0 %v5606_v8  ;;  %v5660_v8 = vpack.c.bf16 %v3598_v5, %v3597_v4  ;;  %v3204_v4 = vld [vmem:[%s7317_s9 + $0x50] sm:$0xff]  ;;  %v3205_v5 = vld [vmem:[%s7317_s9 + $0x58] sm:$0xff] }
 0x5e3   : > { %5608 = vmatprep.subr.bf16.mxu0 %v5995_v14 }
 0x5e4   : > { %5634 = vmatpush3.bf16.msra.mxu1 %v5633_v11  ;;  %v5687_v11 = vpack.c.bf16 %v3616_v7, %v3615_v60 }
 0x5e5   : > { %5635 = vmatprep.subr.bf16.mxu1 %v5995_v14 }
 0x5e6   : > { %5610 = vmatpush3.bf16.msra.mxu0 %v5609_v16  ;;  %v3618_v16 = vld [vmem:[%s7315_s7 + $0x608] sm:$0xff] }
 0x5e7   : > { %5611 = vmatprep.subr.bf16.mxu0 %v5995_v14  ;;  %v5690_v18 = vpack.c.bf16 %v3618_v16, %v3617_v15 }
 0x5e8   : > { %5637 = vmatpush3.bf16.msra.mxu1 %v5636_v19  ;;  %v2938_v19 = vrot.slane %v7014_v26, 2 }
 0x5e9   : > { %5638 = vmatprep.subr.bf16.mxu1 %v5995_v14 }
 0x5ea   : > { %5613 = vmatpush3.bf16.msra.mxu0 %v5612_v22  ;;  %v5693_v22 = vpack.c.bf16 %v3620_v21, %v3619_v20 }
 0x5eb   : > { %5614 = vmatprep.subr.bf16.mxu0 %v5995_v14 }
 0x5ec   : > { %5640 = vmatpush3.bf16.msra.mxu1 %v5639_v25  ;;  %v5696_v25 = vpack.c.bf16 %v3622_v24, %v3621_v23 }
 0x5ed   : > { %5665 = vmatprep.subr.bf16.mxu1 %v5995_v14 }
 0x5ee   : > { %5616 = vmatpush3.bf16.msra.mxu0 %v5615_v29  ;;  %v3625_v29 = vld [vmem:[%s7315_s7 + $0x640] sm:$0xff] }
 0x5ef   : > { %4893 = vmatmul.mubr.f32.vlgmr.msra.gmra.mrb[32].mxu1 %v2848_v32  ;;  %5641 = vmatprep.subr.bf16.mxu0 %v5995_v14  ;;  %v5702_v6 = vpack.c.bf16 %v3626_v30, %v3625_v29  ;;  %v3628_v32 = vld [vmem:[%s7315_s7 + $0x658] sm:$0xff] }
 0x5f0   : > { %5667 = vmatpush3.bf16.msra.mxu1 %v5666_v31  ;;  %4962 = vmatprep.mubr.msk.f32.mxu1 %vm5996_vm5, %v5997_v3  ;;  %v3627_v31 = vld [vmem:[%s7315_s7 + $0x650] sm:$0xff] }
 0x5f1   : > { %4858 = vmatmul.mubr.f32.vlgmr.msra.gmra.mrb[16].mxu0 %v7014_v26  ;;  %5668 = vmatprep.subr.bf16.mxu1 %v5995_v14  ;;  %v5705_v33 = vpack.c.bf16 %v3628_v32, %v3627_v31  ;;  %v3196_v26 = vld [vmem:[%s7317_s9 + $0x10] sm:$0xff] }
 0x5f2   : > { %5643 = vmatpush3.bf16.msra.mxu0 %v5642_v34  ;;  %4927 = vmatprep.mubr.msk.f32.mxu0 %vm5996_vm5, %v5997_v3  ;;  %v3630_v34 = vld [vmem:[%s7315_s7 + $0x668] sm:$0xff] }
 0x5f3   : > { %5644 = vmatprep.subr.bf16.mxu0 %v5995_v14  ;;  %v5708_v36 = vpack.c.bf16 %v3630_v34, %v3629_v35 }
 0x5f4   : > { %5670 = vmatpush3.bf16.msra.mxu1 %v5669_v38  ;;  %v3632_v38 = vld [vmem:[%s7315_s7 + $0x678] sm:$0xff] }
 0x5f5   : > { %5671 = vmatprep.subr.bf16.mxu1 %v5995_v14  ;;  %v5711_v40 = vpack.c.bf16 %v3632_v38, %v3631_v37  ;;  %v3191_v37 = vld [vmem:[%s7316_s8] sm:$0x1] }
 0x5f6   : > { %5646 = vmatpush3.bf16.msra.mxu0 %v5645_v41 }
 0x5f7   : > { %5647 = vmatprep.subr.bf16.mxu0 %v5995_v14 }
 0x5f8   : > { %5673 = vmatpush3.bf16.msra.mxu1 %v5672_v44 }
 0x5f9   : > { %5674 = vmatprep.subr.bf16.mxu1 %v5995_v14 }
 0x5fa   : > { %5649 = vmatpush3.bf16.msra.mxu0 %v5648_v47 }
 0x5fb   : > { %5650 = vmatprep.subr.bf16.mxu0 %v5995_v14 }
 0x5fc   : > { %5676 = vmatpush3.bf16.msra.mxu1 %v5675_v51 }
 0x5fd   : > { %5677 = vmatprep.subr.bf16.mxu1 %v5995_v14 }
 0x5fe   : > { %5652 = vmatpush3.bf16.msra.mxu0 %v5651_v53  ;;  %v5714_v53 = vpack.c.bf16 %v3195_v52, %v3194_v12 }
 0x5ff   : > { %5653 = vmatprep.subr.bf16.mxu0 %v5995_v14 }
 0x600   : > { %5679 = vmatpush3.bf16.msra.mxu1 %v5678_v55  ;;  %v5717_v55 = vpack.c.bf16 %v3197_v50, %v3196_v26 }
 0x601   : > { %5680 = vmatprep.subr.bf16.mxu1 %v5995_v14 }
 0x602   : > { %5655 = vmatpush3.bf16.msra.mxu0 %v5654_v61  ;;  %v5720_v61 = vpack.c.bf16 %v3199_v58, %v3198_v57 }
 0x603   : > { %5656 = vmatprep.subr.bf16.mxu0 %v5995_v14 }
 0x604   : > { %5682 = vmatpush3.bf16.msra.mxu1 %v5681_v0  ;;  %v5723_v0 = vpack.c.bf16 %v3201_v63, %v3200_v62 }
 0x605   : > { %5683 = vmatprep.subr.bf16.mxu1 %v5995_v14 }
 0x606   : > { %5658 = vmatpush3.bf16.msra.mxu0 %v5657_v2  ;;  %v5726_v2 = vpack.c.bf16 %v3203_v1, %v3202_v56 }
 0x607   : > { %5659 = vmatprep.subr.bf16.mxu0 %v5995_v14 }
 0x608   : > { %5685 = vmatpush3.bf16.msra.mxu1 %v5684_v59  ;;  %v5729_v59 = vpack.c.bf16 %v3205_v5, %v3204_v4 }
 0x609   : > { %5686 = vmatprep.subr.bf16.mxu1 %v5995_v14 }
 0x60a   : > { %5661 = vmatpush3.bf16.msra.mxu0 %v5660_v8  ;;  %v3206_v8 = vld [vmem:[%s7317_s9 + $0x60] sm:$0xff] }
 0x60b   : > { %5662 = vmatprep.subr.bf16.mxu0 %v5995_v14 }
 0x60c   : > { %5688 = vmatpush3.bf16.msra.mxu1 %v5687_v11  ;;  %v5732_v11 = vpack.c.bf16 %v3207_v9, %v3206_v8 }
 0x60d   : > { %5713 = vmatprep.subr.bf16.mxu1 %v5995_v14 }
 0x60e   : > { %5664 = vmatpush3.bf16.msra.mxu0 %v5663_v13 }
 0x60f   : > { %4963 = vmatmul.mubr.f32.vlgmr.msra.gmra.mrb[34].mxu1 %v3028_v17  ;;  %5689 = vmatprep.subr.bf16.mxu0 %v5995_v14  ;;  %v3208_v17 = vld [vmem:[%s7317_s9 + $0x70] sm:$0xff] }
 0x610   : > { %5032 = vmatprep.mubr.msk.f32.mxu1 %vm5996_vm5, %v5997_v3  ;;  %5715 = vmatpush3.bf16.msra.mxu1 %v5714_v53 }
 0x611   : > { %4928 = vmatmul.mubr.f32.vlgmr.msra.gmra.mrb[18].mxu0 %v2938_v19  ;;  %5716 = vmatprep.subr.bf16.mxu1 %v5995_v14 }
 0x612   : > { %5691 = vmatpush3.bf16.msra.mxu0 %v5690_v18  ;;  %4997 = vmatprep.mubr.msk.f32.mxu0 %vm5996_vm5, %v5997_v3  ;;  %v3624_v3 = vld [vmem:[%s7315_s7 + $0x638] sm:$0xff] }
 0x613   : > { %5692 = vmatprep.subr.bf16.mxu0 %v5995_v14  ;;  %v5699_v28 = vpack.c.bf16 %v3624_v3, %v3623_v27  ;;  %v3209_v18 = vld [vmem:[%s7317_s9 + $0x78] sm:$0xff] }
 0x614   : > { %5718 = vmatpush3.bf16.msra.mxu1 %v5717_v55  ;;  %v5735_v19 = vpack.c.bf16 %v3209_v18, %v3208_v17 }
 0x615   : > { %5719 = vmatprep.subr.bf16.mxu1 %v5995_v14 }
 0x616   : > { %5694 = vmatpush3.bf16.msra.mxu0 %v5693_v22 }
 0x617   : > { %5695 = vmatprep.subr.bf16.mxu0 %v5995_v14 }
 0x618   : > { %5721 = vmatpush3.bf16.msra.mxu1 %v5720_v61 }
 0x619   : > { %5722 = vmatprep.subr.bf16.mxu1 %v5995_v14 }
 0x61a   : > { %5697 = vmatpush3.bf16.msra.mxu0 %v5696_v25 }
 0x61b   : > { %5698 = vmatprep.subr.bf16.mxu0 %v5995_v14 }
 0x61c   : > { %5724 = vmatpush3.bf16.msra.mxu1 %v5723_v0 }
 0x61d   : > { %5725 = vmatprep.subr.bf16.mxu1 %v5995_v14 }
 0x61e   : > { %5700 = vmatpush3.bf16.msra.mxu0 %v5699_v28 }
 0x61f   : > { %5701 = vmatprep.subr.bf16.mxu0 %v5995_v14 }
 0x620   : > { %5727 = vmatpush3.bf16.msra.mxu1 %v5726_v2 }
 0x621   : > { %5728 = vmatprep.subr.bf16.mxu1 %v5995_v14 }
 0x622   : > { %5703 = vmatpush3.bf16.msra.mxu0 %v5702_v6 }
 0x623   : > { %5704 = vmatprep.subr.bf16.mxu0 %v5995_v14 }
 0x624   : > { %5730 = vmatpush3.bf16.msra.mxu1 %v5729_v59 }
 0x625   : > { %5731 = vmatprep.subr.bf16.mxu1 %v5995_v14 }
 0x626   : > { %5706 = vmatpush3.bf16.msra.mxu0 %v5705_v33 }
 0x627   : > { %5707 = vmatprep.subr.bf16.mxu0 %v5995_v14 }
 0x628   : > { %5733 = vmatpush3.bf16.msra.mxu1 %v5732_v11 }
 0x629   : > { %5734 = vmatprep.subr.bf16.mxu1 %v5995_v14 }
 0x62a   : > { %5709 = vmatpush3.bf16.msra.mxu0 %v5708_v36 }
 0x62b   : > { %5710 = vmatprep.subr.bf16.mxu0 %v5995_v14 }
 0x62c   : > { %5736 = vmatpush3.bf16.msra.mxu1 %v5735_v19 }
 0x62e   : > { %5712 = vmatpush3.bf16.msra.mxu0 %v5711_v40 }
 0x631   : > { %4998 = vmatmul.mubr.f32.vlgmr.msra.gmra.mrb[20].mxu0 %v3118_v39 }
 0x642   : > { %v2198_v41 = vpop.f32.mrb[24].mxu1 }
 0x643   : > { %v4614_v42 = vpop.f32.mrb[25].mxu1 }
 0x644   : > { %v2128_v43 = vpop.f32.mrb[8].mxu0  ;;  %v3210_v42 = vld [vmem:[%s7318_s10] sm:$0x1] }
 0x645   : > { %v2199_v44 = vadd.f32 %v2198_v41, %v2128_v43  ;;  %v4579_v45 = vpop.f32.mrb[9].mxu0 }
 0x662   : > { %v2377_v46 = vpop.f32.mrb[26].mxu1 }
 0x663   : > { %v4684_v47 = vpop.f32.mrb[27].mxu1 }
 0x664   : > { %v2287_v48 = vpop.f32.mrb[10].mxu0 }
 0x665   : > { %v2291_v49 = vadd.f32 %v2287_v48, %v2199_v44  ;;  %v4649_v51 = vpop.f32.mrb[11].mxu0 }
 0x667   : > { %v2381_v54 = vadd.f32 %v2377_v46, %v2291_v49 }
 0x682   : > { %v2557_v60 = vpop.f32.mrb[28].mxu1 }
 0x683   : > { %v4754_v7 = vpop.f32.mrb[29].mxu1 }
 0x684   : > { %v2467_v10 = vpop.f32.mrb[12].mxu0 }
 0x685   : > { %v2471_v13 = vadd.f32 %v2467_v10, %v2381_v54  ;;  %v4719_v15 = vpop.f32.mrb[13].mxu0 }
 0x687   : > { %v2561_v16 = vadd.f32 %v2557_v60, %v2471_v13 }
 0x6a2   : > { %v2737_v20 = vpop.f32.mrb[30].mxu1 }
 0x6a3   : > { %v4824_v21 = vpop.f32.mrb[31].mxu1 }
 0x6a4   : > { %v2647_v22 = vpop.f32.mrb[14].mxu0 }
 0x6a5   : > { %v2651_v23 = vadd.f32 %v2647_v22, %v2561_v16  ;;  %v4789_v24 = vpop.f32.mrb[15].mxu0 }
 0x6a7   : > { %v2741_v25 = vadd.f32 %v2737_v20, %v2651_v23 }
 0x6c2   : > { %v2916_v27 = vpop.f32.mrb[32].mxu1 }
 0x6c3   : > { %v4894_v3 = vpop.f32.mrb[33].mxu1 }
 0x6c4   : > { %v2825_v28 = vpop.f32.mrb[16].mxu0 }
 0x6c5   : > { %v2829_v14 = vadd.f32 %v2825_v28, %v2741_v25  ;;  %v4859_v29 = vpop.f32.mrb[17].mxu0 }
 0x6c7   : > { %v2920_v30 = vadd.f32 %v2916_v27, %v2829_v14 }
 0x6e2   : > { %v3096_v6 = vpop.f32.mrb[34].mxu1 }
 0x6e3   : > { %v4964_v31 = vpop.f32.mrb[35].mxu1 }
 0x6e4   : > { %v3006_v32 = vpop.f32.mrb[18].mxu0 }
 0x6e5   : > { %v3010_v33 = vadd.f32 %v3006_v32, %v2920_v30  ;;  %v4929_v35 = vpop.f32.mrb[19].mxu0 }
 0x6e7   : > { %v3100_v34 = vadd.f32 %v3096_v6, %v3010_v33 }
 0x704   : > { %v3186_v36 = vpop.f32.mrb[20].mxu0 }
 0x705   : > { %v3190_v38 = vadd.f32 %v3186_v36, %v3100_v34  ;;  %v4999_v40 = vpop.f32.mrb[21].mxu0 }
 0x707   : > { %v3192_v39 = vadd.f32 %v3191_v37, %v3190_v38 }
 0x709   : > { %v3193_v41 = vmax.f32 %v3192_v39, 0.0 }
 0x70b   : > { %5033 = vmatmul.mubr.f32.vlgmr.msra.gmra.mrb[36].mxu1 %v3193_v41 }
 0x7de   : > { %v3277_v43 = vpop.f32.mrb[36].mxu1 }
 0x7df   : > { %v3278_v44 = vadd.f32 %v3277_v43, %v3210_v42  ;;  %v5034_v45 = vpop.f32.mrb[37].mxu1 }
 0x7e1   : > { %3282 = vst.msk [vmem:[%s422_s30] sm:$0x1] %vm3281_vm6, %v3278_v44 }
 0x7e2   : > { %5930 = shalt.err (!%p5927_p9)
}
 0x7e3   : > { %s5931_s29 = scalar_lea.hbm %s7266_s15, 16  ;;  %s5935_s17 = scalar_lea.hbm %s7349_s12, 32 }
 0x7e4   : > { %p5932_p2 = scmp.ne.s32.totalorder %s7266_s15, %s5931_s29  ;;  %p5936_p5 = scmp.lt.u32.totalorder %s7266_s15, %s7349_s12 }
 0x7e5   : > { %p5937_p10 = scmp.lt.u32.totalorder %s5935_s17, %s5931_s29  ;;  %p5939_p12 = scmp.lt.u32.totalorder %s5931_s29, %s7266_s15 }
 0x7e6   : > { %p5933_p0 = pnand %p5932_p2, %p7350_p7 }
 0x7e7   : > { %p5938_p4 = por %p5937_p10, %p5936_p5 }
 0x7e8   : > { %p5934_p3 = pneg %p5933_p0 }
 0x7e9   : > { %p5940_p8 = por %p5939_p12, %p5938_p4 }
 0x7eb   : > { %p5941_p11 = pnand %p5940_p8, %p5934_p3 }
 0x7ed   : > { %5944 = shalt.err (!%p5941_p11)
}
 0x7ee   : > { %5769 = dma.vmem_to_hbm [thread:$0]  (%p7350_p7), %s7268_s14, 16, %s7266_s15, %s3284_s11  }
 0x7ef PF: > { %s7351_s25 = sld [smem:[#allocation14_spill]]  ;;  %s7352_s30 = sld [smem:[#allocation12_spill]] }
 0x7f0   : > { %s7353_s16 = sld [smem:[#allocation17_spill]] }
 0x7f5   : > { %p5791_p13 = scmp.ge.s32.totalorder %s7351_s25, 2  ;;  %s3308_s19 = sand.u32 1, %s7352_s30  }
 0x7f6   : > { %p7354_p1 = scmp.ne.s32.totalorder %s7353_s16, 0  ;;  %s3309_s23 = scalar_lea.sflag [#allocation4], %s3308_s19 }
 0x7f8   : > { %p5782_p6 = pnand %p5791_p13, %p7354_p1 }
 0x7fa   : > { %5970 = dma.done.wait (!%p5782_p6), %s3309_s23, 16  }
 0x7fb   : > { %5972 = vsyncadd (!%p5782_p6), %s3309_s23, 4294967280  ;;  %s7355_s20 = sld [smem:[#allocation15_spill]]  ;;  %s7356_s21 = sld [smem:[#allocation13_spill]] }
 0x7fc   : > { %s7357_s19 = sld [smem:[#allocation16_spill]]  ;;  %s7358_s17 = smov %s5979_s18 }
 0x801   : > { %p23_p9 = scmp.ge.s32.totalorder %s7355_s20, 4   ;;  %s7359_s18 = smov %s7356_s21 }
 0x803   :  { %25 = sbr.rel (!%p23_p9) target bundleno = 7 (0x7), region = 136 }
 0x80a   :  { %3313 = vsyncpa [#allocation3], 1 }
 0x80b   :  { %3315 = vsyncpa [#allocation3 + $0x1], 1 }
 0x80c   :  { %3316 = vsyncpa [#allocation6], 1 }
 0x80d   :  { %3317 = vsyncpa [#allocation4], 1 }
 0x80e   :  { %3319 = vsyncpa [#allocation4 + $0x1], 1 }

</bundles_post_ra>
